<compile_context>
chip_gen: v5e
topology: v5e:2x2
jax: 0.10.0
libtpu: 0.0.40
codegen_flags: <defaults>
</compile_context>

<pallas_src>
import functools

import jax
import jax.numpy as jnp
from jax import lax
from jax.experimental import pallas as pl
from jax.experimental.pallas import tpu as pltpu


MAX_TILE_B = 128          # samples per grid step for real batches
N_POS = 36                # conv3 output positions (6x6) == fc1 input features


# ----------------------------- fused Pallas kernel ---------------------------

def _fused_kernel(p_ref, w1_ref, b1_ref, w2_ref, b2_ref, w3_ref, b3_ref,
                  wft_ref, bf_ref, alpha_ref, out_ref, *, tile_b):
    a0 = alpha_ref[0]
    a1 = alpha_ref[1]
    a2 = alpha_ref[2]

    # conv1: all 16 receptive-field positions per row at once (block-diag W1).
    # bf16 x bf16 on the MXU, f32 accumulation.
    y = jnp.dot(p_ref[...], w1_ref[...], preferred_element_type=jnp.float32)
    y = y + b1_ref[...]                                  # [ROWS, 240] f32
    y = jnp.where(y > 0.0, y, (1.0 - a0) * y)

    # conv2: 4 positions per row at once (block-diag W2), bf16 MXU, f32 acc.
    y = jnp.dot(y.astype(jnp.bfloat16), w2_ref[...],
                preferred_element_type=jnp.float32)
    y = y + b2_ref[...]                                  # [ROWS, 60] f32
    y = jnp.where(y > 0.0, y, (1.0 - a1) * y)

    # conv3: one scalar per row -> 60-lane reduce on VPU/XLU (off the MXU).
    z = jnp.sum(y * w3_ref[...], axis=-1, keepdims=True) + b3_ref[...]  # [ROWS, 1]
    z = jnp.where(z > 0.0, z, (1.0 - a2) * z)

    # flatten + fc1: scale each row by its position's fc1 weights, then sum the
    # 36 position blocks per sample (rows are position-major: row = p*tile_b+n).
    g = z * wft_ref[...]                                 # [ROWS, 10] f32
    logits = g[0:tile_b, :]
    for p in range(1, N_POS):                            # 36 static, 8-aligned slices
        logits = logits + g[p * tile_b:(p + 1) * tile_b, :]
    logits = logits + bf_ref[...]                        # [tile_b, 10]

    # log_softmax over the 10 classes
    m = jnp.max(logits, axis=-1, keepdims=True)
    s = logits - m
    lse = jnp.log(jnp.sum(jnp.exp(s), axis=-1, keepdims=True))
    out_ref[...] = s - lse


# ----------------------------- XLA-side glue ---------------------------------

def _build_patches(x_nhw, tile_b):
    """x: [N, 28, 28] (N multiple of tile_b) -> bf16 [N*36, 64].

    Row r = tile*ROWS + pos*tile_b + sample_in_tile  (position-major per tile).
    Lane L = (qh, qw, kh2, kw2, kh1, kw1): the full 8x8 input receptive field
    of conv3 output position (u, v), grouped so the fused block-diagonal conv
    weights apply directly.
    """
    N = x_nhw.shape[0]
    xb = x_nhw.reshape(N, 7, 2, 2, 7, 2, 2)              # (n, I, kh2, kh1, J, kw2, kw1)
    xb = xb.transpose(0, 1, 4, 2, 5, 3, 6)               # (n, I, J, kh2, kw2, kh1, kw1)
    blocks = xb.reshape(N, 7, 7, 16)                     # 4x4 input blocks
    parts = [blocks[:, qh:qh + 6, qw:qw + 6, :]
             for qh in (0, 1) for qw in (0, 1)]          # conv3 tap (qh, qw) shift
    p = jnp.concatenate(parts, axis=-1)                  # [N, 6, 6, 64]
    p = p.reshape(N // tile_b, tile_b, N_POS, 64)
    p = p.transpose(0, 2, 1, 3)                          # position-major within tile
    return p.reshape(N * N_POS, 64).astype(jnp.bfloat16)


def _build_fused_weights(params, tile_b):
    # per-conv matmul weights in (kh, kw, c_in) -> c_out layout
    w1m = params["conv1_w"].transpose(2, 3, 1, 0).reshape(4, 15)
    w2m = params["conv2_w"].transpose(2, 3, 1, 0).reshape(60, 15)
    w3row = params["conv3_w"].transpose(2, 3, 1, 0).reshape(1, 60)   # f32, VPU use

    w1big = jnp.kron(jnp.eye(16, dtype=jnp.float32), w1m).astype(jnp.bfloat16)  # [64, 240]
    w2big = jnp.kron(jnp.eye(4, dtype=jnp.float32), w2m).astype(jnp.bfloat16)   # [240, 60]
    b1big = jnp.tile(params["conv1_b"], 16).reshape(1, 240)
    b2big = jnp.tile(params["conv2_b"], 4).reshape(1, 60)
    b3 = params["conv3_b"].reshape(1, 1)

    # fc1 weights, position-major to match the patch row order.
    wft = jnp.repeat(params["fc1_w"].T, tile_b, axis=0)  # [tile_b*36, 10] f32
    bf = params["fc1_b"].reshape(1, 10)
    return w1big, b1big, w2big, b2big, w3row, b3, wft, bf


# ----------------------------- parameters ------------------------------------

def init_params(key):
    ks = jax.random.split(key, 8)

    def uni(k, shape, fan_in):
        bound = 1.0 / jnp.sqrt(float(fan_in))
        return jax.random.uniform(k, shape, jnp.float32, -bound, bound)

    return {
        "conv1_w": uni(ks[0], (15, 1, 2, 2), 1 * 2 * 2),
        "conv1_b": uni(ks[1], (15,), 1 * 2 * 2),
        "conv2_w": uni(ks[2], (15, 15, 2, 2), 15 * 2 * 2),
        "conv2_b": uni(ks[3], (15,), 15 * 2 * 2),
        "conv3_w": uni(ks[4], (1, 15, 2, 2), 15 * 2 * 2),
        "conv3_b": uni(ks[5], (1,), 15 * 2 * 2),
        "fc1_w": uni(ks[6], (10, 36), 36),
        "fc1_b": uni(ks[7], (10,), 36),
        # th.clamp(tensor([0.2, 0.2, 0.5]), 0, 1)
        "alpha": jnp.clip(jnp.array([0.2, 0.2, 0.5], dtype=jnp.float32), 0.0, 1.0),
    }


# ----------------------------- forward ---------------------------------------

@jax.jit
def classifier_net_forward(params, x_nchw):
    """x_nchw: [N, 1, 28, 28] float32. Returns (log_probs [N, 10], alpha [3])."""
    N = x_nchw.shape[0]
    alpha = params["alpha"]

    # Static tile choice: big tile for real batches, minimal padding for tiny ones.
    tile_b = MAX_TILE_B if N >= MAX_TILE_B else max(8, ((N + 7) // 8) * 8)
    rows = tile_b * N_POS

    x = x_nchw[:, 0, :, :].astype(jnp.float32)            # [N, 28, 28]
    n_pad = (-N) % tile_b
    if n_pad:
        x = jnp.pad(x, ((0, n_pad), (0, 0), (0, 0)))
    n_total = N + n_pad

    p = _build_patches(x, tile_b)                          # bf16 [n_total*36, 64]
    (w1big, b1big, w2big, b2big, w3row, b3,
     wft, bf) = _build_fused_weights(params, tile_b)

    grid = (n_total // tile_b,)
    out = pl.pallas_call(
        functools.partial(_fused_kernel, tile_b=tile_b),
        out_shape=jax.ShapeDtypeStruct((n_total, 10), jnp.float32),
        grid=grid,
        in_specs=[
            pl.BlockSpec((rows, 64), lambda i: (i, 0)),        # patches (bf16, batch-tiled)
            pl.BlockSpec((64, 240), lambda i: (0, 0)),         # fused conv1 weight (bf16)
            pl.BlockSpec((1, 240), lambda i: (0, 0)),
            pl.BlockSpec((240, 60), lambda i: (0, 0)),         # fused conv2 weight (bf16)
            pl.BlockSpec((1, 60), lambda i: (0, 0)),
            pl.BlockSpec((1, 60), lambda i: (0, 0)),           # conv3 weight row (f32)
            pl.BlockSpec((1, 1), lambda i: (0, 0)),
            pl.BlockSpec((rows, 10), lambda i: (0, 0)),        # fc1 weight, position-major
            pl.BlockSpec((1, 10), lambda i: (0, 0)),
            pl.BlockSpec(memory_space=pltpu.MemorySpace.SMEM), # alpha (3 scalars)
        ],
        out_specs=pl.BlockSpec((tile_b, 10), lambda i: (i, 0)),
        compiler_params=pltpu.CompilerParams(
            dimension_semantics=("parallel",),                 # both TCs on v7x
            vmem_limit_bytes=40 * 1024 * 1024),
    )(p, w1big, b1big, w2big, b2big, w3row, b3, wft, bf, alpha)

    return out[:N], alpha


# ----------------------------- pure-JAX reference ----------------------------

def _conv2d(x, w, b, stride):
    y = lax.conv_general_dilated(x, w, (stride, stride), "VALID",
                                 dimension_numbers=("NCHW", "OIHW", "NCHW"))
    return y + b.reshape(1, -1, 1, 1)


def reference_forward(params, x_nchw):
    a = params["alpha"]
    y = _conv2d(x_nchw, params["conv1_w"], params["conv1_b"], 2)
    y = jnp.where(y > 0, y, (1.0 - a[0]) * y)
    y = _conv2d(y, params["conv2_w"], params["conv2_b"], 2)
    y = jnp.where(y > 0, y, (1.0 - a[1]) * y)
    y = _conv2d(y, params["conv3_w"], params["conv3_b"], 1)
    y = jnp.where(y > 0, y, (1.0 - a[2]) * y)
    y = y.reshape(x_nchw.shape[0], -1)
    logits = y @ params["fc1_w"].T + params["fc1_b"]
    return jax.nn.log_softmax(logits, axis=-1), a


# ----------------------------- main -------------------------------------------

if __name__ == "__main__":
    key = jax.random.PRNGKey(0)
    k_param, k_x1, k_x2 = jax.random.split(key, 3)

    params = init_params(k_param)

    # Small demo batch (input shape implied by fc1(36): 28x28 single-channel, NCHW).
    x_small = jax.random.normal(k_x1, (2, 1, 28, 28), dtype=jnp.float32)
    lp_small, alpha = classifier_net_forward(params, x_small)
    jax.block_until_ready((lp_small, alpha))

    assert lp_small.shape == (2, 10)
    assert alpha.shape == (3,)
    assert jnp.allclose(jnp.sum(jnp.exp(lp_small), axis=1), 1.0, atol=1e-3)

    ref_lp, ref_alpha = reference_forward(params, x_small)
    # bf16 matmul operands (f32 accumulation) -> loosened tolerance vs the f32 ref.
    assert jnp.allclose(lp_small, ref_lp, atol=1e-1, rtol=1e-1), (
        float(jnp.max(jnp.abs(lp_small - ref_lp))))
    assert jnp.allclose(alpha, ref_alpha)

    # Larger batch exercises the TILE_B=128 path (2 grid steps, megacore-parallel).
    x_big = jax.random.normal(k_x2, (256, 1, 28, 28), dtype=jnp.float32)
    lp_big, _ = classifier_net_forward(params, x_big)
    jax.block_until_ready(lp_big)
    ref_big, _ = reference_forward(params, x_big)
    assert lp_big.shape == (256, 10)
    assert jnp.allclose(jnp.sum(jnp.exp(lp_big), axis=1), 1.0, atol=1e-3)
    assert jnp.allclose(lp_big, ref_big, atol=1e-1, rtol=1e-1), (
        float(jnp.max(jnp.abs(lp_big - ref_big))))

    print("KERNEL_OK")
</pallas_src>

<mosaic_0001>
module attributes {stable_mosaic.version = 11 : i64} {
  func.func @_fused_kernel(%arg0: i32, %arg1: memref<288x64xbf16, #tpu.memory_space<vmem>>, %arg2: memref<64x240xbf16, #tpu.memory_space<vmem>>, %arg3: memref<1x240xf32, #tpu.memory_space<vmem>>, %arg4: memref<240x60xbf16, #tpu.memory_space<vmem>>, %arg5: memref<1x60xf32, #tpu.memory_space<vmem>>, %arg6: memref<1x60xf32, #tpu.memory_space<vmem>>, %arg7: memref<1x1xf32, #tpu.memory_space<vmem>>, %arg8: memref<288x10xf32, #tpu.memory_space<vmem>>, %arg9: memref<1x10xf32, #tpu.memory_space<vmem>>, %arg10: memref<3xf32, #tpu.memory_space<smem>>, %arg11: memref<8x10xf32, #tpu.memory_space<vmem>>) attributes {dimension_semantics = [#tpu.dimension_semantics<parallel>], iteration_bounds = array<i64: 1>, scalar_prefetch = 0 : i64, scratch_operands = 0 : i64, tpu.core_type = #tpu.core_type<tc>, window_params = [{transform_indices = @transform_0, window_bounds = array<i64: 288, 64>}, {pipeline_mode = #tpu.pipeline_mode<synchronous>, transform_indices = @transform_1, window_bounds = array<i64: 64, 240>}, {pipeline_mode = #tpu.pipeline_mode<synchronous>, transform_indices = @transform_2, window_bounds = array<i64: 1, 240>}, {pipeline_mode = #tpu.pipeline_mode<synchronous>, transform_indices = @transform_3, window_bounds = array<i64: 240, 60>}, {pipeline_mode = #tpu.pipeline_mode<synchronous>, transform_indices = @transform_4, window_bounds = array<i64: 1, 60>}, {pipeline_mode = #tpu.pipeline_mode<synchronous>, transform_indices = @transform_5, window_bounds = array<i64: 1, 60>}, {pipeline_mode = #tpu.pipeline_mode<synchronous>, transform_indices = @transform_6, window_bounds = array<i64: 1, 1>}, {pipeline_mode = #tpu.pipeline_mode<synchronous>, transform_indices = @transform_7, window_bounds = array<i64: 288, 10>}, {pipeline_mode = #tpu.pipeline_mode<synchronous>, transform_indices = @transform_8, window_bounds = array<i64: 1, 10>}, {transform_indices = @transform_9, window_bounds = array<i64: 3>}, {transform_indices = @transform_10, window_bounds = array<i64: 8, 10>}]} {
    %c0 = arith.constant 0 : index
    %0 = memref.load %arg10[%c0] : memref<3xf32, #tpu.memory_space<smem>>
    %c1 = arith.constant 1 : index
    %1 = memref.load %arg10[%c1] : memref<3xf32, #tpu.memory_space<smem>>
    %c2 = arith.constant 2 : index
    %2 = memref.load %arg10[%c2] : memref<3xf32, #tpu.memory_space<smem>>
    %c0_0 = arith.constant 0 : index
    %c0_1 = arith.constant 0 : index
    %3 = vector.load %arg1[%c0_0, %c0_1] : memref<288x64xbf16, #tpu.memory_space<vmem>>, vector<288x64xbf16>
    %c0_2 = arith.constant 0 : index
    %c0_3 = arith.constant 0 : index
    %4 = vector.load %arg2[%c0_2, %c0_3] : memref<64x240xbf16, #tpu.memory_space<vmem>>, vector<64x240xbf16>
    %cst = arith.constant dense<0.000000e+00> : vector<288x240xf32>
    %5 = tpu.matmul %3, %4, %cst {dimension_numbers = #tpu.dot_dimension_numbers<[1], [0], [0], [1], [0, 0, 1, 1], [], []>} : vector<288x64xbf16>, vector<64x240xbf16>, vector<288x240xf32> -> vector<288x240xf32>
    %c0_4 = arith.constant 0 : index
    %c0_5 = arith.constant 0 : index
    %6 = vector.load %arg3[%c0_4, %c0_5] : memref<1x240xf32, #tpu.memory_space<vmem>>, vector<1x240xf32>
    %7 = vector.broadcast %6 : vector<1x240xf32> to vector<288x240xf32>
    %8 = arith.addf %5, %7 : vector<288x240xf32>
    %cst_6 = arith.constant 0.000000e+00 : f32
    %9 = vector.broadcast %cst_6 : f32 to vector<288x240xf32>
    %10 = arith.cmpf ogt, %8, %9 : vector<288x240xf32>
    %cst_7 = arith.constant 1.000000e+00 : f32
    %11 = arith.subf %cst_7, %0 : f32
    %12 = vector.broadcast %11 : f32 to vector<288x240xf32>
    %13 = arith.mulf %12, %8 : vector<288x240xf32>
    %14 = arith.select %10, %8, %13 : vector<288x240xi1>, vector<288x240xf32>
    %15 = arith.truncf %14 : vector<288x240xf32> to vector<288x240xbf16>
    %c0_8 = arith.constant 0 : index
    %c0_9 = arith.constant 0 : index
    %16 = vector.load %arg4[%c0_8, %c0_9] : memref<240x60xbf16, #tpu.memory_space<vmem>>, vector<240x60xbf16>
    %cst_10 = arith.constant dense<0.000000e+00> : vector<288x60xf32>
    %17 = tpu.matmul %15, %16, %cst_10 {dimension_numbers = #tpu.dot_dimension_numbers<[1], [0], [0], [1], [0, 0, 1, 1], [], []>} : vector<288x240xbf16>, vector<240x60xbf16>, vector<288x60xf32> -> vector<288x60xf32>
    %c0_11 = arith.constant 0 : index
    %c0_12 = arith.constant 0 : index
    %18 = vector.load %arg5[%c0_11, %c0_12] : memref<1x60xf32, #tpu.memory_space<vmem>>, vector<1x60xf32>
    %19 = vector.broadcast %18 : vector<1x60xf32> to vector<288x60xf32>
    %20 = arith.addf %17, %19 : vector<288x60xf32>
    %cst_13 = arith.constant 0.000000e+00 : f32
    %21 = vector.broadcast %cst_13 : f32 to vector<288x60xf32>
    %22 = arith.cmpf ogt, %20, %21 : vector<288x60xf32>
    %cst_14 = arith.constant 1.000000e+00 : f32
    %23 = arith.subf %cst_14, %1 : f32
    %24 = vector.broadcast %23 : f32 to vector<288x60xf32>
    %25 = arith.mulf %24, %20 : vector<288x60xf32>
    %26 = arith.select %22, %20, %25 : vector<288x60xi1>, vector<288x60xf32>
    %c0_15 = arith.constant 0 : index
    %c0_16 = arith.constant 0 : index
    %27 = vector.load %arg6[%c0_15, %c0_16] : memref<1x60xf32, #tpu.memory_space<vmem>>, vector<1x60xf32>
    %28 = vector.broadcast %27 : vector<1x60xf32> to vector<288x60xf32>
    %29 = arith.mulf %26, %28 : vector<288x60xf32>
    %cst_17 = arith.constant dense<0.000000e+00> : vector<288xf32>
    %30 = vector.multi_reduction <add>, %29, %cst_17 [1] : vector<288x60xf32> to vector<288xf32>
    %31 = vector.shape_cast %30 : vector<288xf32> to vector<288x1xf32>
    %c0_18 = arith.constant 0 : index
    %c0_19 = arith.constant 0 : index
    %32 = vector.load %arg7[%c0_18, %c0_19] : memref<1x1xf32, #tpu.memory_space<vmem>>, vector<1x1xf32>
    %33 = vector.broadcast %32 : vector<1x1xf32> to vector<288x1xf32>
    %34 = arith.addf %31, %33 : vector<288x1xf32>
    %cst_20 = arith.constant 0.000000e+00 : f32
    %35 = vector.broadcast %cst_20 : f32 to vector<288x1xf32>
    %36 = arith.cmpf ogt, %34, %35 : vector<288x1xf32>
    %cst_21 = arith.constant 1.000000e+00 : f32
    %37 = arith.subf %cst_21, %2 : f32
    %38 = vector.broadcast %37 : f32 to vector<288x1xf32>
    %39 = arith.mulf %38, %34 : vector<288x1xf32>
    %40 = arith.select %36, %34, %39 : vector<288x1xi1>, vector<288x1xf32>
    %c0_22 = arith.constant 0 : index
    %c0_23 = arith.constant 0 : index
    %41 = vector.load %arg8[%c0_22, %c0_23] : memref<288x10xf32, #tpu.memory_space<vmem>>, vector<288x10xf32>
    %42 = vector.broadcast %40 : vector<288x1xf32> to vector<288x10xf32>
    %43 = arith.mulf %42, %41 : vector<288x10xf32>
    %44 = vector.extract_strided_slice %43 {offsets = [0, 0], sizes = [8, 10], strides = [1, 1]} : vector<288x10xf32> to vector<8x10xf32>
    %45 = vector.extract_strided_slice %43 {offsets = [8, 0], sizes = [8, 10], strides = [1, 1]} : vector<288x10xf32> to vector<8x10xf32>
    %46 = arith.addf %44, %45 : vector<8x10xf32>
    %47 = vector.extract_strided_slice %43 {offsets = [16, 0], sizes = [8, 10], strides = [1, 1]} : vector<288x10xf32> to vector<8x10xf32>
    %48 = arith.addf %46, %47 : vector<8x10xf32>
    %49 = vector.extract_strided_slice %43 {offsets = [24, 0], sizes = [8, 10], strides = [1, 1]} : vector<288x10xf32> to vector<8x10xf32>
    %50 = arith.addf %48, %49 : vector<8x10xf32>
    %51 = vector.extract_strided_slice %43 {offsets = [32, 0], sizes = [8, 10], strides = [1, 1]} : vector<288x10xf32> to vector<8x10xf32>
    %52 = arith.addf %50, %51 : vector<8x10xf32>
    %53 = vector.extract_strided_slice %43 {offsets = [40, 0], sizes = [8, 10], strides = [1, 1]} : vector<288x10xf32> to vector<8x10xf32>
    %54 = arith.addf %52, %53 : vector<8x10xf32>
    %55 = vector.extract_strided_slice %43 {offsets = [48, 0], sizes = [8, 10], strides = [1, 1]} : vector<288x10xf32> to vector<8x10xf32>
    %56 = arith.addf %54, %55 : vector<8x10xf32>
    %57 = vector.extract_strided_slice %43 {offsets = [56, 0], sizes = [8, 10], strides = [1, 1]} : vector<288x10xf32> to vector<8x10xf32>
    %58 = arith.addf %56, %57 : vector<8x10xf32>
    %59 = vector.extract_strided_slice %43 {offsets = [64, 0], sizes = [8, 10], strides = [1, 1]} : vector<288x10xf32> to vector<8x10xf32>
    %60 = arith.addf %58, %59 : vector<8x10xf32>
    %61 = vector.extract_strided_slice %43 {offsets = [72, 0], sizes = [8, 10], strides = [1, 1]} : vector<288x10xf32> to vector<8x10xf32>
    %62 = arith.addf %60, %61 : vector<8x10xf32>
    %63 = vector.extract_strided_slice %43 {offsets = [80, 0], sizes = [8, 10], strides = [1, 1]} : vector<288x10xf32> to vector<8x10xf32>
    %64 = arith.addf %62, %63 : vector<8x10xf32>
    %65 = vector.extract_strided_slice %43 {offsets = [88, 0], sizes = [8, 10], strides = [1, 1]} : vector<288x10xf32> to vector<8x10xf32>
    %66 = arith.addf %64, %65 : vector<8x10xf32>
    %67 = vector.extract_strided_slice %43 {offsets = [96, 0], sizes = [8, 10], strides = [1, 1]} : vector<288x10xf32> to vector<8x10xf32>
    %68 = arith.addf %66, %67 : vector<8x10xf32>
    %69 = vector.extract_strided_slice %43 {offsets = [104, 0], sizes = [8, 10], strides = [1, 1]} : vector<288x10xf32> to vector<8x10xf32>
    %70 = arith.addf %68, %69 : vector<8x10xf32>
    %71 = vector.extract_strided_slice %43 {offsets = [112, 0], sizes = [8, 10], strides = [1, 1]} : vector<288x10xf32> to vector<8x10xf32>
    %72 = arith.addf %70, %71 : vector<8x10xf32>
    %73 = vector.extract_strided_slice %43 {offsets = [120, 0], sizes = [8, 10], strides = [1, 1]} : vector<288x10xf32> to vector<8x10xf32>
    %74 = arith.addf %72, %73 : vector<8x10xf32>
    %75 = vector.extract_strided_slice %43 {offsets = [128, 0], sizes = [8, 10], strides = [1, 1]} : vector<288x10xf32> to vector<8x10xf32>
    %76 = arith.addf %74, %75 : vector<8x10xf32>
    %77 = vector.extract_strided_slice %43 {offsets = [136, 0], sizes = [8, 10], strides = [1, 1]} : vector<288x10xf32> to vector<8x10xf32>
    %78 = arith.addf %76, %77 : vector<8x10xf32>
    %79 = vector.extract_strided_slice %43 {offsets = [144, 0], sizes = [8, 10], strides = [1, 1]} : vector<288x10xf32> to vector<8x10xf32>
    %80 = arith.addf %78, %79 : vector<8x10xf32>
    %81 = vector.extract_strided_slice %43 {offsets = [152, 0], sizes = [8, 10], strides = [1, 1]} : vector<288x10xf32> to vector<8x10xf32>
    %82 = arith.addf %80, %81 : vector<8x10xf32>
    %83 = vector.extract_strided_slice %43 {offsets = [160, 0], sizes = [8, 10], strides = [1, 1]} : vector<288x10xf32> to vector<8x10xf32>
    %84 = arith.addf %82, %83 : vector<8x10xf32>
    %85 = vector.extract_strided_slice %43 {offsets = [168, 0], sizes = [8, 10], strides = [1, 1]} : vector<288x10xf32> to vector<8x10xf32>
    %86 = arith.addf %84, %85 : vector<8x10xf32>
    %87 = vector.extract_strided_slice %43 {offsets = [176, 0], sizes = [8, 10], strides = [1, 1]} : vector<288x10xf32> to vector<8x10xf32>
    %88 = arith.addf %86, %87 : vector<8x10xf32>
    %89 = vector.extract_strided_slice %43 {offsets = [184, 0], sizes = [8, 10], strides = [1, 1]} : vector<288x10xf32> to vector<8x10xf32>
    %90 = arith.addf %88, %89 : vector<8x10xf32>
    %91 = vector.extract_strided_slice %43 {offsets = [192, 0], sizes = [8, 10], strides = [1, 1]} : vector<288x10xf32> to vector<8x10xf32>
    %92 = arith.addf %90, %91 : vector<8x10xf32>
    %93 = vector.extract_strided_slice %43 {offsets = [200, 0], sizes = [8, 10], strides = [1, 1]} : vector<288x10xf32> to vector<8x10xf32>
    %94 = arith.addf %92, %93 : vector<8x10xf32>
    %95 = vector.extract_strided_slice %43 {offsets = [208, 0], sizes = [8, 10], strides = [1, 1]} : vector<288x10xf32> to vector<8x10xf32>
    %96 = arith.addf %94, %95 : vector<8x10xf32>
    %97 = vector.extract_strided_slice %43 {offsets = [216, 0], sizes = [8, 10], strides = [1, 1]} : vector<288x10xf32> to vector<8x10xf32>
    %98 = arith.addf %96, %97 : vector<8x10xf32>
    %99 = vector.extract_strided_slice %43 {offsets = [224, 0], sizes = [8, 10], strides = [1, 1]} : vector<288x10xf32> to vector<8x10xf32>
    %100 = arith.addf %98, %99 : vector<8x10xf32>
    %101 = vector.extract_strided_slice %43 {offsets = [232, 0], sizes = [8, 10], strides = [1, 1]} : vector<288x10xf32> to vector<8x10xf32>
    %102 = arith.addf %100, %101 : vector<8x10xf32>
    %103 = vector.extract_strided_slice %43 {offsets = [240, 0], sizes = [8, 10], strides = [1, 1]} : vector<288x10xf32> to vector<8x10xf32>
    %104 = arith.addf %102, %103 : vector<8x10xf32>
    %105 = vector.extract_strided_slice %43 {offsets = [248, 0], sizes = [8, 10], strides = [1, 1]} : vector<288x10xf32> to vector<8x10xf32>
    %106 = arith.addf %104, %105 : vector<8x10xf32>
    %107 = vector.extract_strided_slice %43 {offsets = [256, 0], sizes = [8, 10], strides = [1, 1]} : vector<288x10xf32> to vector<8x10xf32>
    %108 = arith.addf %106, %107 : vector<8x10xf32>
    %109 = vector.extract_strided_slice %43 {offsets = [264, 0], sizes = [8, 10], strides = [1, 1]} : vector<288x10xf32> to vector<8x10xf32>
    %110 = arith.addf %108, %109 : vector<8x10xf32>
    %111 = vector.extract_strided_slice %43 {offsets = [272, 0], sizes = [8, 10], strides = [1, 1]} : vector<288x10xf32> to vector<8x10xf32>
    %112 = arith.addf %110, %111 : vector<8x10xf32>
    %113 = vector.extract_strided_slice %43 {offsets = [280, 0], sizes = [8, 10], strides = [1, 1]} : vector<288x10xf32> to vector<8x10xf32>
    %114 = arith.addf %112, %113 : vector<8x10xf32>
    %c0_24 = arith.constant 0 : index
    %c0_25 = arith.constant 0 : index
    %115 = vector.load %arg9[%c0_24, %c0_25] : memref<1x10xf32, #tpu.memory_space<vmem>>, vector<1x10xf32>
    %116 = vector.broadcast %115 : vector<1x10xf32> to vector<8x10xf32>
    %117 = arith.addf %114, %116 : vector<8x10xf32>
    %cst_26 = arith.constant dense<0xFF800000> : vector<8xf32>
    %118 = vector.multi_reduction <maximumf>, %117, %cst_26 [1] : vector<8x10xf32> to vector<8xf32>
    %119 = vector.shape_cast %118 : vector<8xf32> to vector<8x1xf32>
    %120 = vector.broadcast %119 : vector<8x1xf32> to vector<8x10xf32>
    %121 = arith.subf %117, %120 : vector<8x10xf32>
    %122 = math.exp %121 : vector<8x10xf32>
    %cst_27 = arith.constant dense<0.000000e+00> : vector<8xf32>
    %123 = vector.multi_reduction <add>, %122, %cst_27 [1] : vector<8x10xf32> to vector<8xf32>
    %124 = vector.shape_cast %123 : vector<8xf32> to vector<8x1xf32>
    %125 = math.log %124 : vector<8x1xf32>
    %126 = vector.broadcast %125 : vector<8x1xf32> to vector<8x10xf32>
    %127 = arith.subf %121, %126 : vector<8x10xf32>
    %c0_28 = arith.constant 0 : index
    %c0_29 = arith.constant 0 : index
    %128 = vector.load %arg11[%c0_28, %c0_29] : memref<8x10xf32, #tpu.memory_space<vmem>>, vector<8x10xf32>
    tpu.vector_store %arg11[%c0_28, %c0_29], %127 {strides = array<i32>} : memref<8x10xf32, #tpu.memory_space<vmem>>, vector<8x10xf32>,
    return
  }
  func.func @transform_0(%arg0: i32) -> (i32, i32) {
    %c0_i32 = arith.constant 0 : i32
    %c0_i32_0 = arith.constant 0 : i32
    return %arg0, %c0_i32 : i32, i32
  }
  func.func @transform_1(%arg0: i32) -> (i32, i32) {
    %c0_i32 = arith.constant 0 : i32
    %c0_i32_0 = arith.constant 0 : i32
    %c0_i32_1 = arith.constant 0 : i32
    return %c0_i32, %c0_i32_0 : i32, i32
  }
  func.func @transform_2(%arg0: i32) -> (i32, i32) {
    %c0_i32 = arith.constant 0 : i32
    %c0_i32_0 = arith.constant 0 : i32
    %c0_i32_1 = arith.constant 0 : i32
    return %c0_i32, %c0_i32_0 : i32, i32
  }
  func.func @transform_3(%arg0: i32) -> (i32, i32) {
    %c0_i32 = arith.constant 0 : i32
    %c0_i32_0 = arith.constant 0 : i32
    %c0_i32_1 = arith.constant 0 : i32
    return %c0_i32, %c0_i32_0 : i32, i32
  }
  func.func @transform_4(%arg0: i32) -> (i32, i32) {
    %c0_i32 = arith.constant 0 : i32
    %c0_i32_0 = arith.constant 0 : i32
    %c0_i32_1 = arith.constant 0 : i32
    return %c0_i32, %c0_i32_0 : i32, i32
  }
  func.func @transform_5(%arg0: i32) -> (i32, i32) {
    %c0_i32 = arith.constant 0 : i32
    %c0_i32_0 = arith.constant 0 : i32
    %c0_i32_1 = arith.constant 0 : i32
    return %c0_i32, %c0_i32_0 : i32, i32
  }
  func.func @transform_6(%arg0: i32) -> (i32, i32) {
    %c0_i32 = arith.constant 0 : i32
    %c0_i32_0 = arith.constant 0 : i32
    %c0_i32_1 = arith.constant 0 : i32
    return %c0_i32, %c0_i32_0 : i32, i32
  }
  func.func @transform_7(%arg0: i32) -> (i32, i32) {
    %c0_i32 = arith.constant 0 : i32
    %c0_i32_0 = arith.constant 0 : i32
    %c0_i32_1 = arith.constant 0 : i32
    return %c0_i32, %c0_i32_0 : i32, i32
  }
  func.func @transform_8(%arg0: i32) -> (i32, i32) {
    %c0_i32 = arith.constant 0 : i32
    %c0_i32_0 = arith.constant 0 : i32
    %c0_i32_1 = arith.constant 0 : i32
    return %c0_i32, %c0_i32_0 : i32, i32
  }
  func.func @transform_9(%arg0: i32) -> i32 {
    %c0_i32 = arith.constant 0 : i32
    %c0_i32_0 = arith.constant 0 : i32
    return %c0_i32 : i32
  }
  func.func @transform_10(%arg0: i32) -> (i32, i32) {
    %c0_i32 = arith.constant 0 : i32
    %c0_i32_0 = arith.constant 0 : i32
    return %arg0, %c0_i32 : i32, i32
  }
}

</mosaic_0001>

<bundles_post_ra>
// kernel: mul.18
= control target key start
LH: loop header
LB: loop body
LE: loop exit
PB: predicated region body
PF: predicated region fallthrough
CT: control target
= control target key end

     0   :  { %vm126_vm0 = vcmask 1043458   ;;  %s159_s28 = smov 3  ;;  %s162_s29 = smov 12  ;;  %vm130_vm1 = vcmask 1045508   ;;  %vm134_vm2 = vcmask 1047558   ;;  %vm153_vm3 = vcmask 1046534   ;;  %s483_s0 = inlined_call_operand.vmem [shape: f32[2,2,15,15], index: 0, kind: input, shape index: {}]   ;;  %s484_s1 = inlined_call_operand.vmem [shape: f32[60,15], index: 1, kind: output, shape index: {}]  }
   0x1   :  { %v304_v0 = vld [vmem:[%s483_s0 + $0x1e] sm:$0x3]  ;;  %v306_v1 = vld [vmem:[%s483_s0 + $0x1a] sm:$0x3]  ;;  %v308_v2 = vld [vmem:[%s483_s0 + $0x16] sm:$0x3] }
   0x2   :  { %63 = vst [vmem:[#allocation0 + $0x78] sm:$0x3] %v304_v0  ;;  %v310_v3 = vld [vmem:[%s483_s0 + $0x12] sm:$0x3]  ;;  %v312_v4 = vld [vmem:[%s483_s0 + $0xe] sm:$0x3] }
   0x3   :  { %71 = vst [vmem:[#allocation0 + $0x68] sm:$0x3] %v306_v1  ;;  %v314_v5 = vld [vmem:[%s483_s0 + $0xa] sm:$0x3]  ;;  %v316_v6 = vld [vmem:[%s483_s0 + $0x6] sm:$0x3] }
   0x4   :  { %79 = vst [vmem:[#allocation0 + $0x58] sm:$0x3] %v308_v2  ;;  %v318_v7 = vld [vmem:[%s483_s0 + $0x2] sm:$0x3]  ;;  %v290_v8 = vld [vmem:[%s483_s0 + $0x3a] sm:$0x3] }
   0x5   :  { %87 = vst [vmem:[#allocation0 + $0x48] sm:$0x3] %v310_v3  ;;  %v292_v9 = vld [vmem:[%s483_s0 + $0x36] sm:$0x3]  ;;  %v294_v10 = vld [vmem:[%s483_s0 + $0x32] sm:$0x3] }
   0x6   :  { %95 = vst [vmem:[#allocation0 + $0x38] sm:$0x3] %v312_v4  ;;  %v296_v11 = vld [vmem:[%s483_s0 + $0x2e] sm:$0x3]  ;;  %s167_s3 = smov 48  ;;  %s172_s4 = smov 192 }
   0x7   :  { %103 = vst [vmem:[#allocation0 + $0x28] sm:$0x3] %v314_v5  ;;  %v298_v12 = vld [vmem:[%s483_s0 + $0x2a] sm:$0x3]  ;;  %s203_s7 = smov 3  ;;  %s206_s10 = smov 12 }
   0x8   :  { %111 = vst [vmem:[#allocation0 + $0x18] sm:$0x3] %v316_v6  ;;  %v300_v13 = vld [vmem:[%s483_s0 + $0x26] sm:$0x3]  ;;  %s211_s11 = smov 48  ;;  %s216_s12 = smov 192 }
   0x9   :  { %119 = vst [vmem:[#allocation0 + $0x8] sm:$0x3] %v318_v7  ;;  %v302_v14 = vld [vmem:[%s483_s0 + $0x22] sm:$0x3]  ;;  %v305_v15 = vld [vmem:[%s483_s0 + $0x1c] sm:$0x3] }
   0xa   :  { %7 = vst [vmem:[#allocation0 + $0xe8] sm:$0x3] %v290_v8  ;;  %v307_v16 = vld [vmem:[%s483_s0 + $0x18] sm:$0x3]  ;;  %v309_v20 = vld [vmem:[%s483_s0 + $0x14] sm:$0x3] }
   0xb   :  { %15 = vst [vmem:[#allocation0 + $0xd8] sm:$0x3] %v292_v9  ;;  %v311_v31 = vld [vmem:[%s483_s0 + $0x10] sm:$0x3]  ;;  %s326_s23 = smov 45   ;;  %s181_s24 = smov 3 }
   0xc   :  { %23 = vst [vmem:[#allocation0 + $0xc8] sm:$0x3] %v294_v10  ;;  %s184_s25 = smov 12  ;;  %v313_v33 = vld [vmem:[%s483_s0 + $0xc] sm:$0x3]  ;;  %s225_s30 = smov 3 }
   0xd   :  { %31 = vst [vmem:[#allocation0 + $0xb8] sm:$0x3] %v296_v11  ;;  %v315_v34 = vld [vmem:[%s483_s0 + $0x8] sm:$0x3]  ;;  %s233_s5 = smov 48  ;;  %s247_s20 = smov 3 }
   0xe   :  { %39 = vst [vmem:[#allocation0 + $0xa8] sm:$0x3] %v298_v12  ;;  %v317_v36 = vld [vmem:[%s483_s0 + $0x4] sm:$0x3]  ;;  %v120_v38 = vld [vmem:[%s483_s0] sm:$0x3] }
   0xf   :  { %47 = vst [vmem:[#allocation0 + $0x98] sm:$0x3] %v300_v13  ;;  %v291_v39 = vld [vmem:[%s483_s0 + $0x38] sm:$0x3]  ;;  %v293_v49 = vld [vmem:[%s483_s0 + $0x34] sm:$0x3] }
  0x10   :  { %v160_v17 = vld [vmem:[#allocation0 + $0x9] ss:$16 sm:%s159_s28]   ;;  %v204_v23 = vld [vmem:[#allocation0 + $0x8] ss:$16 sm:%s203_s7]   ;;  %55 = vst [vmem:[#allocation0 + $0x88] sm:$0x3] %v302_v14 }
  0x11   :  { %v163_v18 = vld [vmem:[#allocation0 + $0x9] ss:$16 sm:%s162_s29]   ;;  %v207_v24 = vld [vmem:[#allocation0 + $0x8] ss:$16 sm:%s206_s10]   ;;  %67 = vst [vmem:[#allocation0 + $0x70] sm:$0x3] %v305_v15 }
  0x12   :  { %v168_v19 = vld [vmem:[#allocation0 + $0x9] ss:$16 sm:%s167_s3]   ;;  %v165_v21 = vsel %vm126_vm0, %v163_v18, %v160_v17  ;;  %v209_v26 = vsel %vm126_vm0, %v207_v24, %v204_v23  ;;  %v212_v27 = vld [vmem:[#allocation0 + $0x8] ss:$16 sm:%s211_s11]   ;;  %75 = vst [vmem:[#allocation0 + $0x60] sm:$0x3] %v307_v16 }
  0x13   :  { %v173_v22 = vld [vmem:[#allocation0 + $0x9] ss:$16 sm:%s172_s4]   ;;  %v170_v25 = vsel %vm130_vm1, %v168_v19, %v165_v21  ;;  %v217_v28 = vld [vmem:[#allocation0 + $0x8] ss:$16 sm:%s216_s12]   ;;  %v214_v30 = vsel %vm130_vm1, %v212_v27, %v209_v26  ;;  %s327_s28 = smov 30   ;;  %s189_s29 = smov 48 }
  0x14   :  { %v175_v29 = vsel %vm134_vm2, %v173_v22, %v170_v25  ;;  %v219_v32 = vsel %vm134_vm2, %v217_v28, %v214_v30  ;;  %83 = vst [vmem:[#allocation0 + $0x50] sm:$0x3] %v309_v20  ;;  %s228_s4 = smov 12  ;;  %v194_v35 = vld [vmem:[#allocation0 + $0xe3] sm:$0x40]   ;;  %s250_s21 = smov 12 }
  0x15   :  { %176 = vrot.lane.b32.xlu0 %v175_v29, %s326_s23  ;;  %220 = vrot.lane.b32.xlu1 %v219_v32, %s327_s28  ;;  %91 = vst [vmem:[#allocation0 + $0x40] sm:$0x3] %v311_v31  ;;  %v238_v37 = vld [vmem:[#allocation0 + $0xe2] sm:$0x40]   ;;  %v295_v52 = vld [vmem:[%s483_s0 + $0x30] sm:$0x3] }
  0x16   :  { %99 = vst [vmem:[#allocation0 + $0x30] sm:$0x3] %v313_v33  ;;  %v297_v54 = vld [vmem:[%s483_s0 + $0x2c] sm:$0x3]  ;;  %v299_v55 = vld [vmem:[%s483_s0 + $0x28] sm:$0x3] }
  0x17   :  { %107 = vst [vmem:[#allocation0 + $0x20] sm:$0x3] %v315_v34  ;;  %v182_v40 = vld [vmem:[#allocation0 + $0x89] ss:$16 sm:%s181_s24]   ;;  %v226_v44 = vld [vmem:[#allocation0 + $0x88] ss:$16 sm:%s225_s30]  }
  0x18   :  { %v185_v41 = vld [vmem:[#allocation0 + $0x89] ss:$16 sm:%s184_s25]   ;;  %v229_v45 = vld [vmem:[#allocation0 + $0x88] ss:$16 sm:%s228_s4]   ;;  %115 = vst [vmem:[#allocation0 + $0x10] sm:$0x3] %v317_v36 }
  0x19   :  { %v190_v42 = vld [vmem:[#allocation0 + $0x89] ss:$16 sm:%s189_s29]   ;;  %v187_v43 = vsel %vm126_vm0, %v185_v41, %v182_v40  ;;  %v234_v46 = vld [vmem:[#allocation0 + $0x88] ss:$16 sm:%s233_s5]   ;;  %v231_v48 = vsel %vm126_vm0, %v229_v45, %v226_v44  ;;  %121 = vst [vmem:[#allocation0] sm:$0x3] %v120_v38 }
  0x1a   :  { %v192_v47 = vsel %vm130_vm1, %v190_v42, %v187_v43  ;;  %v236_v51 = vsel %vm130_vm1, %v234_v46, %v231_v48  ;;  %11 = vst [vmem:[#allocation0 + $0xe0] sm:$0x3] %v291_v39  ;;  %v301_v56 = vld [vmem:[%s483_s0 + $0x24] sm:$0x3]  ;;  %s255_s24 = smov 48  ;;  %s260_s25 = smov 192 }
  0x1b   :  { %v196_v50 = vsel %vm153_vm3, %v194_v35, %v192_v47  ;;  %v240_v53 = vsel %vm153_vm3, %v238_v37, %v236_v51  ;;  %19 = vst [vmem:[#allocation0 + $0xd0] sm:$0x3] %v293_v49  ;;  %v303_v57 = vld [vmem:[%s483_s0 + $0x20] sm:$0x3]  ;;  %s122_s0 = smov 3  ;;  %s128_s29 = smov 48 }
  0x1c   :  { %27 = vst [vmem:[#allocation0 + $0xc0] sm:$0x3] %v295_v52  ;;  %s132_s30 = smov 192  ;;  %vm136_vm4 = vcmask 121856   ;;  %s328_s2 = smov 15   ;;  %vm178_vm5 = vcmask 490856  }
  0x1d   :  { %197 = vrot.lane.b32.xlu0 %v196_v50, %s326_s23  ;;  %241 = vrot.lane.b32.xlu1 %v240_v53, %s327_s28  ;;  %35 = vst [vmem:[#allocation0 + $0xb0] sm:$0x3] %v297_v54  ;;  %s124_s28 = smov 12  ;;  %s269_s3 = smov 3  ;;  %vm222_vm6 = vcmask 367856   ;;  %vm266_vm7 = vcmask 244856  }
  0x1e   :  { %43 = vst [vmem:[#allocation0 + $0xa0] sm:$0x3] %v299_v55  ;;  %s272_s4 = smov 12  ;;  %s277_s5 = smov 48 }
  0x1f   :  { %51 = vst [vmem:[#allocation0 + $0x90] sm:$0x3] %v301_v56  ;;  %s139_s8 = smov 3  ;;  %s142_s9 = smov 12 }
  0x20   :  { %v248_v58 = vld [vmem:[#allocation0 + $0x1] ss:$16 sm:%s247_s20]   ;;  %59 = vst [vmem:[#allocation0 + $0x80] sm:$0x3] %v303_v57  ;;  %v123_v0 = vld [vmem:[#allocation0] ss:$16 sm:%s122_s0]  }
  0x21   :  { %v251_v59 = vld [vmem:[#allocation0 + $0x1] ss:$16 sm:%s250_s21]   ;;  %v125_v1 = vld [vmem:[#allocation0] ss:$16 sm:%s124_s28]   ;;  %s147_s10 = smov 48 }
  0x22   :  { %v256_v60 = vld [vmem:[#allocation0 + $0x1] ss:$16 sm:%s255_s24]   ;;  %v253_v61 = vsel %vm126_vm0, %v251_v59, %v248_v58  ;;  %v129_v2 = vld [vmem:[#allocation0] ss:$16 sm:%s128_s29]   ;;  %v127_v4 = vsel %vm126_vm0, %v125_v1, %v123_v0 }
  0x23   :  { %v261_v62 = vld [vmem:[#allocation0 + $0x1] ss:$16 sm:%s260_s25]   ;;  %v258_v63 = vsel %vm130_vm1, %v256_v60, %v253_v61  ;;  %v133_v5 = vld [vmem:[#allocation0] ss:$16 sm:%s132_s30]   ;;  %v131_v6 = vsel %vm130_vm1, %v129_v2, %v127_v4 }
  0x24   :  { %v263_v3 = vsel %vm134_vm2, %v261_v62, %v258_v63  ;;  %v135_v7 = vsel %vm134_vm2, %v133_v5, %v131_v6  ;;  %v282_v8 = vld [vmem:[#allocation0 + $0xdb] sm:$0x40]   ;;  %v152_v19 = vld [vmem:[#allocation0 + $0xda] sm:$0x40]  }
  0x25   :  { %264 = vrot.lane.b32.xlu2 %v263_v3, %s328_s2  ;;  %137 = vst.msk [vmem:[%s484_s1] sm:$0xff] %vm136_vm4, %v135_v7  }
  0x27   :  { %v270_v9 = vld [vmem:[#allocation0 + $0x81] ss:$16 sm:%s269_s3]   ;;  %v140_v15 = vld [vmem:[#allocation0 + $0x80] ss:$16 sm:%s139_s8]  }
  0x28   :  { %v273_v10 = vld [vmem:[#allocation0 + $0x81] ss:$16 sm:%s272_s4]   ;;  %v143_v16 = vld [vmem:[#allocation0 + $0x80] ss:$16 sm:%s142_s9]  }
  0x29   :  { %v278_v11 = vld [vmem:[#allocation0 + $0x81] ss:$16 sm:%s277_s5]   ;;  %v275_v12 = vsel %vm126_vm0, %v273_v10, %v270_v9  ;;  %v148_v17 = vld [vmem:[#allocation0 + $0x80] ss:$16 sm:%s147_s10]   ;;  %v145_v18 = vsel %vm126_vm0, %v143_v16, %v140_v15 }
  0x2a   :  { %v280_v13 = vsel %vm130_vm1, %v278_v11, %v275_v12  ;;  %v150_v20 = vsel %vm130_vm1, %v148_v17, %v145_v18 }
  0x2b   :  { %v284_v14 = vsel %vm153_vm3, %v282_v8, %v280_v13  ;;  %v154_v21 = vsel %vm153_vm3, %v152_v19, %v150_v20 }
  0x2c   :  { %319 = vst.msk [vmem:[%s484_s1 + $0x8] sm:$0x7f] %vm136_vm4, %v154_v21  }
  0x2d   :  { %285 = vrot.lane.b32.xlu2 %v284_v14, %s328_s2 }
  0x7f   :  { %v265_v22 = vpop.permute.xlu2 %264  }
  0x87   :  { %v177_v23 = vpop.permute.xlu0 %176   ;;  %v221_v24 = vpop.permute.xlu1 %220  }
  0x88   :  { %179 = vst.msk [vmem:[%s484_s1] sm:$0xff] %vm178_vm5, %v177_v23   ;;  %v286_v25 = vpop.permute.xlu2 %285  }
  0x89   :  { %223 = vst.msk [vmem:[%s484_s1] sm:$0xff] %vm222_vm6, %v221_v24  }
  0x8a   :  { %267 = vst.msk [vmem:[%s484_s1] sm:$0xff] %vm266_vm7, %v265_v22  }
  0x8f   :  { %v198_v26 = vpop.permute.xlu0 %197   ;;  %v242_v27 = vpop.permute.xlu1 %241  }
  0x90   :  { %320 = vst.msk [vmem:[%s484_s1 + $0x8] sm:$0x7f] %vm178_vm5, %v198_v26  }
  0x91   :  { %321 = vst.msk [vmem:[%s484_s1 + $0x8] sm:$0x7f] %vm222_vm6, %v242_v27  }
  0x92   :  { %322 = vst.msk [vmem:[%s484_s1 + $0x8] sm:$0x7f] %vm266_vm7, %v286_v25  }

// kernel: tile.13
= control target key start
LH: loop header
LB: loop body
LE: loop exit
PB: predicated region body
PF: predicated region fallthrough
CT: control target
= control target key end

     0   :  { %s28_s0 = inlined_call_operand.vmem [shape: f32[15], index: 0, kind: input, shape index: {}]   ;;  %s29_s1 = inlined_call_operand.vmem [shape: f32[16,15], index: 1, kind: output, shape index: {}]  }
   0x1   :  { %v4_v0 = vld [vmem:[%s28_s0] ss:$0 sm:$0xff] }
   0x2   :  { %5 = vst [vmem:[%s29_s1] sm:$0xff] %v4_v0 }
   0x3   :  { %8 = vst [vmem:[%s29_s1 + $0x8] sm:$0xff] %v4_v0 }

// kernel: tile.14
= control target key start
LH: loop header
LB: loop body
LE: loop exit
PB: predicated region body
PF: predicated region fallthrough
CT: control target
= control target key end

     0   :  { %vm9_vm0 = vcmask 64512   ;;  %s153_s12 = smov 120   ;;  %s154_s13 = smov 97   ;;  %vm3_vm1 = vcmask 121856   ;;  %vm13_vm2 = vcmask 56320   ;;  %vm16_vm3 = vcmask 1048512   ;;  %s235_s0 = inlined_call_operand.vmem [shape: f32[16,15], index: 0, kind: input, shape index: {}]   ;;  %s236_s1 = inlined_call_operand.vmem [shape: f32[1,240], index: 1, kind: output, shape index: {}]  }
   0x1   :  { %v121_v0 = vld [vmem:[%s235_s0 + $0x8] sm:$0x1]   ;;  %v124_v3 = vld [vmem:[%s235_s0 + $0xf] sm:$0x1]   ;;  %v126_v4 = vld [vmem:[%s235_s0 + $0xe] sm:$0x1]  }
   0x2   :  { %v122_v1 = vld [vmem:[%s235_s0 + $0x8] sm:$0x1]   ;;  %26 = vrot.lane.b32.xlu1 %v124_v3, %s154_s13  ;;  %s155_s16 = smov 82   ;;  %v123_v5 = vld [vmem:[%s235_s0 + $0x7] sm:$0x1]   ;;  %s156_s21 = smov 105  }
   0x3   :  { %v10_v2 = vsel %vm9_vm0, %v122_v1, %v121_v0  ;;  %39 = vrot.lane.b32.xlu2 %v126_v4, %s155_s16  ;;  %v125_v6 = vld [vmem:[%s235_s0 + $0x6] sm:$0x1]   ;;  %s157_s22 = smov 90   ;;  %v127_v7 = vld [vmem:[%s235_s0 + $0x5] sm:$0x1]   ;;  %s158_s25 = smov 75  }
   0x4   :  { %11 = vrot.lane.b32.xlu0 %v10_v2, %s153_s12  ;;  %v128_v8 = vld [vmem:[%s235_s0 + $0xd] sm:$0x1]   ;;  %v129_v9 = vld [vmem:[%s235_s0 + $0x4] sm:$0x1]   ;;  %s159_s30 = smov 67   ;;  %s160_s2 = smov 60  }
   0x5   :  { %v130_v10 = vld [vmem:[%s235_s0 + $0xc] sm:$0x1]   ;;  %s161_s5 = smov 52   ;;  %v131_v11 = vld [vmem:[%s235_s0 + $0x3] sm:$0x1]   ;;  %s162_s10 = smov 45  }
   0x6   :  { %v132_v12 = vld [vmem:[%s235_s0 + $0xb] sm:$0x1]   ;;  %s163_s11 = smov 37   ;;  %v133_v13 = vld [vmem:[%s235_s0 + $0x2] sm:$0x1]   ;;  %s164_s14 = smov 30  }
   0x7   :  { %v134_v14 = vld [vmem:[%s235_s0 + $0xa] sm:$0x1]   ;;  %v135_v15 = vld [vmem:[%s235_s0 + $0x1] sm:$0x1]   ;;  %s165_s19 = smov 22   ;;  %s166_s20 = smov 15  }
   0x8   :  { %v136_v16 = vld [vmem:[%s235_s0 + $0x9] sm:$0x1]   ;;  %s167_s23 = smov 7   ;;  %v2_v17 = vld [vmem:[%s235_s0] sm:$0x1]   ;;  %vm28_vm4 = vcmask 917256  }
   0x9   :  { %4 = vst.msk [vmem:[#allocation0] sm:$0x1] %vm3_vm1, %v2_v17   ;;  %vm41_vm5 = vcmask 794256   ;;  %vm22_vm6 = vcmask 982856   ;;  %vm35_vm7 = vcmask 859856   ;;  %vm48_vm8 = vcmask 736856  }
   0xa   :  { %33 = vrot.lane.b32.xlu1 %v125_v6, %s157_s22  ;;  %vm54_vm9 = vcmask 671256   ;;  %vm67_vm10 = vcmask 548256   ;;  %vm61_vm11 = vcmask 613856   ;;  %vm74_vm12 = vcmask 490856  }
   0xb   :  { %46 = vrot.lane.b32.xlu2 %v127_v7, %s158_s25  ;;  %vm87_vm13 = vcmask 367856   ;;  %vm80_vm14 = vcmask 425256   ;;  %vm93_vm15 = vcmask 302256   ;;  %vm106_vm0 = vcmask 179256  }
   0xc   :  { %20 = vrot.lane.b32.xlu0 %v123_v5, %s156_s21  ;;  %vm100_vm1 = vcmask 244856  }
  0x12   :  { %59 = vrot.lane.b32.xlu1 %v129_v9, %s160_s2 }
  0x13   :  { %65 = vrot.lane.b32.xlu2 %v130_v10, %s161_s5 }
  0x14   :  { %52 = vrot.lane.b32.xlu0 %v128_v8, %s159_s30 }
  0x1a   :  { %78 = vrot.lane.b32.xlu1 %v132_v12, %s163_s11 }
  0x1b   :  { %85 = vrot.lane.b32.xlu2 %v133_v13, %s164_s14 }
  0x1c   :  { %72 = vrot.lane.b32.xlu0 %v131_v11, %s162_s10 }
  0x22   :  { %98 = vrot.lane.b32.xlu1 %v135_v15, %s166_s20 }
  0x23   :  { %104 = vrot.lane.b32.xlu2 %v136_v16, %s167_s23 }
  0x24   :  { %91 = vrot.lane.b32.xlu0 %v134_v14, %s165_s19 }
  0x5d   :  { %v40_v18 = vpop.permute.xlu2 %39  }
  0x65   :  { %v47_v19 = vpop.permute.xlu2 %46  }
  0x6d   :  { %v66_v20 = vpop.permute.xlu2 %65  }
  0x74   :  { %v27_v22 = vpop.permute.xlu1 %26  }
  0x75   :  { %v86_v23 = vpop.permute.xlu2 %85  }
  0x76   :  { %v12_v21 = vpop.permute.xlu0 %11  }
  0x77   :  { %15 = vst.msk [vmem:[#allocation0 + $0x8] sm:$0x1] %vm13_vm2, %v12_v21  }
  0x78   :  { %17 = vst.msk [vmem:[#allocation0] sm:$0x1] %vm16_vm3, %v12_v21  }
  0x79   :  { %30 = vst.msk [vmem:[#allocation0 + $0x8] sm:$0x1] %vm28_vm4, %v27_v22  }
  0x7a   :  { %43 = vst.msk [vmem:[#allocation0 + $0x8] sm:$0x1] %vm41_vm5, %v40_v18  }
  0x7c   :  { %v34_v25 = vpop.permute.xlu1 %33  }
  0x7d   :  { %v105_v26 = vpop.permute.xlu2 %104  }
  0x7e   :  { %v21_v24 = vpop.permute.xlu0 %20  }
  0x7f   :  { %23 = vst.msk [vmem:[#allocation0] sm:$0x1] %vm22_vm6, %v21_v24  }
  0x80   :  { %36 = vst.msk [vmem:[#allocation0] sm:$0x1] %vm35_vm7, %v34_v25  }
  0x81   :  { %49 = vst.msk [vmem:[#allocation0] sm:$0x1] %vm48_vm8, %v47_v19  }
  0x84   :  { %v60_v28 = vpop.permute.xlu1 %59  }
  0x85   :  { %62 = vst.msk [vmem:[#allocation0] sm:$0x1] %vm61_vm11, %v60_v28  }
  0x86   :  { %v53_v27 = vpop.permute.xlu0 %52  }
  0x87   :  { %56 = vst.msk [vmem:[#allocation0 + $0x8] sm:$0x1] %vm54_vm9, %v53_v27  }
  0x88   :  { %69 = vst.msk [vmem:[#allocation0 + $0x8] sm:$0x1] %vm67_vm10, %v66_v20  }
  0x8c   :  { %v79_v30 = vpop.permute.xlu1 %78  }
  0x8d   :  { %82 = vst.msk [vmem:[#allocation0 + $0x8] sm:$0x1] %vm80_vm14, %v79_v30  }
  0x8e   :  { %v73_v29 = vpop.permute.xlu0 %72  }
  0x8f   :  { %75 = vst.msk [vmem:[#allocation0] sm:$0x1] %vm74_vm12, %v73_v29  }
  0x90   :  { %88 = vst.msk [vmem:[#allocation0] sm:$0x1] %vm87_vm13, %v86_v23  }
  0x94   :  { %v99_v32 = vpop.permute.xlu1 %98  }
  0x95   :  { %101 = vst.msk [vmem:[#allocation0] sm:$0x1] %vm100_vm1, %v99_v32  }
  0x96   :  { %v92_v31 = vpop.permute.xlu0 %91  }
  0x97   :  { %95 = vst.msk [vmem:[#allocation0 + $0x8] sm:$0x1] %vm93_vm15, %v92_v31  }
  0x98   :  { %108 = vst.msk [vmem:[#allocation0 + $0x8] sm:$0x1] %vm106_vm0, %v105_v26  }
  0x9c   :  { %v111_v34 = vld [vmem:[#allocation0] sm:$0x1] }
  0x9d   :  { %114 = vst [vmem:[%s236_s1] sm:$0x1] %v111_v34 }
  0x9f   :  { %v116_v33 = vld [vmem:[#allocation0 + $0x8] sm:$0x1] }
  0xa0   :  { %137 = vst [vmem:[%s236_s1 + $0x1] sm:$0x1] %v116_v33 }

// kernel: tile.18
= control target key start
LH: loop header
LB: loop body
LE: loop exit
PB: predicated region body
PF: predicated region fallthrough
CT: control target
= control target key end

     0   :  { %s22_s0 = inlined_call_operand.vmem [shape: f32[15], index: 0, kind: input, shape index: {}]   ;;  %s23_s1 = inlined_call_operand.vmem [shape: f32[4,15], index: 1, kind: output, shape index: {}]  }
   0x1   :  { %v4_v0 = vld [vmem:[%s22_s0] ss:$0 sm:$0xff] }
   0x2   :  { %5 = vst [vmem:[%s23_s1] sm:$0xf] %v4_v0 }

// kernel: tile.19
= control target key start
LH: loop header
LB: loop body
LE: loop exit
PB: predicated region body
PF: predicated region fallthrough
CT: control target
= control target key end

     0   :  { %s37_s8 = smov 15   ;;  %s38_s9 = smov 30   ;;  %vm7_vm0 = vcmask 121856   ;;  %vm13_vm1 = vcmask 490856   ;;  %vm19_vm2 = vcmask 367856   ;;  %vm25_vm3 = vcmask 244856   ;;  %s55_s0 = inlined_call_operand.vmem [shape: f32[4,15], index: 0, kind: input, shape index: {}]   ;;  %s56_s1 = inlined_call_operand.vmem [shape: f32[1,60], index: 1, kind: output, shape index: {}]  }
   0x1   :  { %v4_v0 = vld [vmem:[%s55_s0] sm:$0xf]  ;;  %s36_s0 = smov 45  }
   0x2   :  { %5 = vst [vmem:[#allocation1] sm:$0xf] %v4_v0 }
   0x9   :  { %v10_v1 = vld [vmem:[#allocation1 + $0x3] sm:$0x1]   ;;  %v22_v2 = vld [vmem:[#allocation1 + $0x1] sm:$0x1]   ;;  %v16_v3 = vld [vmem:[#allocation1 + $0x2] sm:$0x1]  }
   0xa   :  { %11 = vrot.lane.b32.xlu0 %v10_v1, %s36_s0  ;;  %23 = vrot.lane.b32.xlu1 %v22_v2, %s37_s8  ;;  %v6_v4 = vld [vmem:[#allocation1] sm:$0x1]  }
   0xb   :  { %8 = vst.msk [vmem:[#allocation0] sm:$0x1] %vm7_vm0, %v6_v4  }
  0x12   :  { %17 = vrot.lane.b32.xlu0 %v16_v3, %s38_s9 }
  0x7c   :  { %v12_v5 = vpop.permute.xlu0 %11   ;;  %v24_v6 = vpop.permute.xlu1 %23  }
  0x7d   :  { %14 = vst.msk [vmem:[#allocation0] sm:$0x1] %vm13_vm1, %v12_v5  }
  0x84   :  { %v18_v7 = vpop.permute.xlu0 %17  }
  0x85   :  { %20 = vst.msk [vmem:[#allocation0] sm:$0x1] %vm19_vm2, %v18_v7  }
  0x86   :  { %26 = vst.msk [vmem:[#allocation0] sm:$0x1] %vm25_vm3, %v24_v6  }
  0x8d   :  { %v29_v8 = vld [vmem:[#allocation0] sm:$0x1] }
  0x8e   :  { %32 = vst [vmem:[%s56_s1] sm:$0x1] %v29_v8 }

// kernel: classifier_net_forward.1
= control target key start
LH: loop header
LB: loop body
LE: loop exit
PB: predicated region body
PF: predicated region fallthrough
CT: control target
= control target key end

     0   :  { %s2967_s0 = inlined_call_operand.vmem [shape: bf16[288,64], index: 0, kind: input, shape index: {}]   ;;  %s2968_s1 = inlined_call_operand.vmem [shape: bf16[64,240], index: 1, kind: input, shape index: {}]   ;;  %s2969_s2 = inlined_call_operand.vmem [shape: f32[1,240], index: 2, kind: input, shape index: {}]   ;;  %s2970_s3 = inlined_call_operand.vmem [shape: bf16[240,60], index: 3, kind: input, shape index: {}]   ;;  %s2971_s4 = inlined_call_operand.vmem [shape: f32[1,60], index: 4, kind: input, shape index: {}]   ;;  %s2972_s5 = inlined_call_operand.vmem [shape: f32[1,60], index: 5, kind: input, shape index: {}]   ;;  %s2973_s6 = inlined_call_operand.<no memory space> [shape: f32[1,1], index: 6, kind: input, shape index: {}]   ;;  %s2974_s7 = inlined_call_operand.vmem [shape: f32[288,10], index: 7, kind: input, shape index: {}]   ;;  %s2975_s8 = inlined_call_operand.vmem [shape: f32[1,10], index: 8, kind: input, shape index: {}]   ;;  %s2976_s9 = inlined_call_operand.vmem [shape: f32[3], index: 9, kind: input, shape index: {}]   ;;  %s2977_s10 = inlined_call_operand.vmem [shape: f32[8,10], index: 10, kind: output, shape index: {}]  }
   0x1   :  { %v15_v0 = vstv %s2973_s6 }
   0x2   :  { %16 = vst [vmem:[#allocation2] sm:$0x1] %v15_v0 }
   0x3   :  { %17 = vsyncpa [#allocation4], 0  ;;  %s41_s17 = sshll.u32 %s2976_s9, 4  ;;  %s2129_s18 = smov [#allocation3]   ;;  %s42_s17 = int_to_ptr.vmem [resolvable:$true] %s41_s17 }
   0x4   :  { %44 = dma.vmem_to_smem %s42_s17, 16, %s2129_s18, [#allocation4]  }
   0x5   :  { %2127 = dma.done.wait [#allocation4], 16  }
   0x6   :  { %2128 = vsyncadd [#allocation4], 4294967280 }
   0x7   :  { %49 = sfence }
   0x8   :  { %v1938_v1 = vld [vmem:[%s2968_s1 + $0x30] sm:$0xf]  ;;  %v2083_v2 = vld [vmem:[%s2968_s1 + $0x34] sm:$0xf0]  ;;  %v2082_v3 = vld [vmem:[%s2968_s1 + $0x34] sm:$0xf] }
   0x9   :  { %v1939_v4 = vor.u32 %v2083_v2, %v1938_v1  ;;  %v1940_v5 = vld [vmem:[%s2968_s1 + $0x38] sm:$0xf0]  ;;  %v1930_v6 = vld [vmem:[%s2968_s1 + $0x20] sm:$0xf]  ;;  %v2081_v7 = vld [vmem:[%s2968_s1 + $0x24] sm:$0xf0] }
   0xa   :  { %v1943_v8 = vor.u32 %v2082_v3, %v1940_v5  ;;  %v2080_v9 = vld [vmem:[%s2968_s1 + $0x24] sm:$0xf]  ;;  %v1932_v10 = vld [vmem:[%s2968_s1 + $0x28] sm:$0xf0]  ;;  %v1931_v11 = vor.u32 %v2081_v7, %v1930_v6  ;;  %v1922_v13 = vld [vmem:[%s2968_s1 + $0x10] sm:$0xf] }
   0xb   :  { %293 = vmatpush.bf16.msra.mxu0 %v1939_v4  ;;  %v1935_v12 = vor.u32 %v2080_v9, %v1932_v10  ;;  %v2079_v14 = vld [vmem:[%s2968_s1 + $0x14] sm:$0xf0]  ;;  %v2078_v15 = vld [vmem:[%s2968_s1 + $0x14] sm:$0xf]  ;;  %v1924_v16 = vld [vmem:[%s2968_s1 + $0x18] sm:$0xf0] }
   0xc   :  { %392 = vmatpush.bf16.msra.mxu1 %v1943_v8  ;;  %v1923_v17 = vor.u32 %v2079_v14, %v1922_v13  ;;  %v1927_v18 = vor.u32 %v2078_v15, %v1924_v16  ;;  %v1914_v19 = vld [vmem:[%s2968_s1] sm:$0xf]  ;;  %v2077_v20 = vld [vmem:[%s2968_s1 + $0x4] sm:$0xf0]  ;;  %v2076_v21 = vld [vmem:[%s2968_s1 + $0x4] sm:$0xf] }
   0xd   :  { %v1916_v22 = vld [vmem:[%s2968_s1 + $0x8] sm:$0xf0]  ;;  %v1915_v23 = vor.u32 %v2077_v20, %v1914_v19  ;;  %v2058_v25 = vld [vmem:[%s2967_s0] sm:$0xff]  ;;  %vm234_vm0 = vcmask 523264   ;;  %v2060_v27 = vld [vmem:[%s2967_s0 + $0x10] sm:$0xff]  ;;  %s51_s27 = sld [smem:[#allocation3]] }
   0xe   :  { %v1919_v24 = vor.u32 %v2076_v21, %v1916_v22  ;;  %v2059_v26 = vld [vmem:[%s2967_s0 + $0x8] sm:$0xff]  ;;  %v2061_v28 = vld [vmem:[%s2967_s0 + $0x18] sm:$0xff]  ;;  %v2062_v29 = vld [vmem:[%s2967_s0 + $0x20] sm:$0xff]  ;;  %vm865_vm5 = vcmask 916480   ;;  %s1838_s18 = sld [smem:[#allocation3 + $0x1]] }
   0xf   :  { %294 = vmatpush.bf16.msra.mxu0 %v1931_v11  ;;  %v2091_v30 = vld [vmem:[%s2970_s3 + $0x38] sm:$0xff]  ;;  %v2063_v31 = vld [vmem:[%s2967_s0 + $0x28] sm:$0xff]  ;;  %v2090_v32 = vld [vmem:[%s2970_s3 + $0x30] sm:$0xff]  ;;  %s2573_s30 = sld [smem:[#allocation3 + $0x2]] }
  0x10   :  { %393 = vmatpush.bf16.msra.mxu1 %v1935_v12  ;;  %920 = vmatpush.bf16.msra.mxu2 %v2091_v30  ;;  %v2098_v33 = vld [vmem:[%s2970_s3 + $0x70] sm:$0xff]  ;;  %v2089_v34 = vld [vmem:[%s2970_s3 + $0x28] sm:$0xff]  ;;  %v2088_v36 = vld [vmem:[%s2970_s3 + $0x20] sm:$0xff] }
  0x11   :  { %1020 = vmatpush.bf16.msra.mxu3 %v2098_v33  ;;  %v2097_v35 = vld [vmem:[%s2970_s3 + $0x68] sm:$0xff]  ;;  %v2096_v37 = vld [vmem:[%s2970_s3 + $0x60] sm:$0xff]  ;;  %v2064_v38 = vld [vmem:[%s2967_s0 + $0x30] sm:$0xff] }
  0x12   :  { %v2087_v39 = vld [vmem:[%s2970_s3 + $0x18] sm:$0xff]  ;;  %v2086_v41 = vld [vmem:[%s2970_s3 + $0x10] sm:$0xff]  ;;  %v2085_v43 = vld [vmem:[%s2970_s3 + $0x8] sm:$0xff] }
  0x13   :  { %295 = vmatpush.bf16.msra.mxu0 %v1923_v17  ;;  %v2095_v40 = vld [vmem:[%s2970_s3 + $0x58] sm:$0xff]  ;;  %v2094_v42 = vld [vmem:[%s2970_s3 + $0x50] sm:$0xff]  ;;  %v2093_v44 = vld [vmem:[%s2970_s3 + $0x48] sm:$0xff] }
  0x14   :  { %394 = vmatpush.bf16.msra.mxu1 %v1927_v18  ;;  %921 = vmatpush.bf16.msra.mxu2 %v2090_v32  ;;  %v2084_v45 = vld [vmem:[%s2970_s3] sm:$0xff]  ;;  %v2065_v47 = vld [vmem:[%s2967_s0 + $0x38] sm:$0xff]  ;;  %v2067_v7 = vld [vmem:[%s2967_s0 + $0x48] sm:$0xff]  ;;  %s1154_s21 = ssub.f32 1.0, %s1838_s18 }
  0x15   :  { %1021 = vmatpush.bf16.msra.mxu3 %v2097_v35  ;;  %v2092_v46 = vld [vmem:[%s2970_s3 + $0x40] sm:$0xff]  ;;  %s559_s3 = ssub.f32 1.0, %s51_s27 }
  0x16   :  { %v98_v48 = vld [vmem:[%s2969_s2] sm:$0x3]  ;;  %s1453_s1 = ssub.f32 1.0, %s2573_s30 }
  0x17   :  { %296 = vmatpush.bf16.msra.mxu0 %v1915_v23  ;;  %v2066_v49 = vld [vmem:[%s2967_s0 + $0x40] sm:$0xff]  ;;  %v2331_v51 = vperm.slane %v98_v48, 0  ;;  %v2333_v53 = vperm.slane %v98_v48, 1  ;;  %v2338_v55 = vstv %s559_s3 }
  0x18   :  { %395 = vmatpush.bf16.msra.mxu1 %v1919_v24  ;;  %922 = vmatpush.bf16.msra.mxu2 %v2089_v34 }
  0x19   :  { %1022 = vmatpush.bf16.msra.mxu3 %v2096_v37 }
  0x1a   :  { %1944 = vmatmul.msk.bf16.vlgmr.msra.gmra.mxu0 %vm234_vm0, %v2058_v25 }
  0x1b   :  { %1962 = vmatmul.msk.bf16.vlgmr.msra.gmra.mxu1 %vm234_vm0, %v2058_v25 }
  0x1c   :  { %923 = vmatpush.bf16.msra.mxu2 %v2088_v36 }
  0x1d   :  { %1023 = vmatpush.bf16.msra.mxu3 %v2095_v40 }
  0x20   :  { %924 = vmatpush.bf16.msra.mxu2 %v2087_v39 }
  0x21   :  { %1024 = vmatpush.bf16.msra.mxu3 %v2094_v42 }
  0x24   :  { %925 = vmatpush.bf16.msra.mxu2 %v2086_v41 }
  0x25   :  { %1025 = vmatpush.bf16.msra.mxu3 %v2093_v44 }
  0x28   :  { %926 = vmatpush.bf16.msra.mxu2 %v2085_v43 }
  0x29   :  { %1026 = vmatpush.bf16.msra.mxu3 %v2092_v46 }
  0x2a   :  { %1945 = vmatmul.msk.bf16.gmra.mxu0 %vm234_vm0, %v2059_v26 }
  0x2b   :  { %1963 = vmatmul.msk.bf16.gmra.mxu1 %vm234_vm0, %v2059_v26  ;;  %v2068_v26 = vld [vmem:[%s2967_s0 + $0x50] sm:$0xff] }
  0x2c   :  { %927 = vmatpush.bf16.msra.mxu2 %v2084_v45 }
  0x3a   :  { %1946 = vmatmul.msk.bf16.gmra.mxu0 %vm234_vm0, %v2060_v27 }
  0x3b   :  { %1964 = vmatmul.msk.bf16.gmra.mxu1 %vm234_vm0, %v2060_v27 }
  0x4a   :  { %1947 = vmatmul.msk.bf16.gmra.mxu0 %vm234_vm0, %v2061_v28 }
  0x4b   :  { %1965 = vmatmul.msk.bf16.gmra.mxu1 %vm234_vm0, %v2061_v28 }
  0x5a   :  { %1948 = vmatmul.msk.bf16.gmra.mxu0 %vm234_vm0, %v2062_v29 }
  0x5b   :  { %1966 = vmatmul.msk.bf16.gmra.mxu1 %vm234_vm0, %v2062_v29 }
  0x6a   :  { %1949 = vmatmul.msk.bf16.gmra.mxu0 %vm234_vm0, %v2063_v31 }
  0x6b   :  { %1967 = vmatmul.msk.bf16.gmra.mxu1 %vm234_vm0, %v2063_v31 }
  0x7a   :  { %1950 = vmatmul.msk.bf16.gmra.mxu0 %vm234_vm0, %v2064_v38 }
  0x7b   :  { %1968 = vmatmul.msk.bf16.gmra.mxu1 %vm234_vm0, %v2064_v38 }
  0x8a   :  { %1951 = vmatmul.msk.bf16.gmra.mxu0 %vm234_vm0, %v2065_v47 }
  0x8b   :  { %1969 = vmatmul.msk.bf16.gmra.mxu1 %vm234_vm0, %v2065_v47 }
  0x97   :  { %v298_v50 = vpop.f32.mrf.mxu0 }
  0x98   :  { %v397_v52 = vpop.f32.mrf.mxu1  ;;  %v299_v54 = vadd.f32 %v298_v50, %v2331_v51 }
  0x99   :  { %v398_v56 = vadd.f32 %v397_v52, %v2333_v53 }
  0x9a   :  { %1952 = vmatmul.msk.bf16.gmra.mxu0 %vm234_vm0, %v2066_v49  ;;  %v561_v58 = vmul.f32 %v2338_v55, %v299_v54  ;;  %vm487_vm1 = vcmp.gt.f32.partialorder %v299_v54, 0.0 }
  0x9b   :  { %1970 = vmatmul.msk.bf16.gmra.mxu1 %vm234_vm0, %v2066_v49  ;;  %v562_v61 = vmul.f32 %v2338_v55, %v398_v56  ;;  %vm488_vm2 = vcmp.gt.f32.partialorder %v398_v56, 0.0 }
  0x9c   :  { %v633_v1 = vsel %vm487_vm1, %v299_v54, %v561_v58 }
  0x9d   :  { %v634_v4 = vsel %vm488_vm2, %v398_v56, %v562_v61 }
  0x9f   :  { %v300_v57 = vpop.f32.mrf.mxu0 }
  0xa0   :  { %v301_v59 = vadd.f32 %v300_v57, %v2331_v51  ;;  %v399_v60 = vpop.f32.mrf.mxu1 }
  0xa1   :  { %v400_v62 = vadd.f32 %v399_v60, %v2333_v53 }
  0xa2   :  { %v563_v63 = vmul.f32 %v2338_v55, %v301_v59  ;;  %vm489_vm3 = vcmp.gt.f32.partialorder %v301_v59, 0.0 }
  0xa3   :  { %vm490_vm4 = vcmp.gt.f32.partialorder %v400_v62, 0.0  ;;  %v564_v0 = vmul.f32 %v2338_v55, %v400_v62 }
  0xa4   :  { %v635_v2 = vsel %vm489_vm3, %v301_v59, %v563_v63 }
  0xa5   :  { %v705_v3 = vpack.c.bf16 %v635_v2, %v633_v1  ;;  %v636_v5 = vsel %vm490_vm4, %v400_v62, %v564_v0 }
  0xa6   :  { %v706_v6 = vpack.c.bf16 %v636_v5, %v634_v4 }
  0xa7   :  { %v303_v8 = vpop.f32.mrf.mxu0  ;;  %928 = vmatmul.bf16.vlgmr.msra.gmra.mxu2 %v705_v3 }
  0xa8   :  { %v402_v9 = vpop.f32.mrf.mxu1  ;;  %2040 = vmatmul.msk.bf16.vlgmr.msra.gmra.mxu3 %vm865_vm5, %v706_v6  ;;  %v304_v10 = vadd.f32 %v303_v8, %v2331_v51 }
  0xa9   :  { %v403_v11 = vadd.f32 %v402_v9, %v2333_v53 }
  0xaa   :  { %1953 = vmatmul.msk.bf16.gmra.mxu0 %vm234_vm0, %v2067_v7  ;;  %v565_v13 = vmul.f32 %v2338_v55, %v304_v10  ;;  %vm491_vm6 = vcmp.gt.f32.partialorder %v304_v10, 0.0 }
  0xab   :  { %1971 = vmatmul.msk.bf16.gmra.mxu1 %vm234_vm0, %v2067_v7  ;;  %v566_v16 = vmul.f32 %v2338_v55, %v403_v11  ;;  %vm492_vm7 = vcmp.gt.f32.partialorder %v403_v11, 0.0 }
  0xac   :  { %v637_v20 = vsel %vm491_vm6, %v304_v10, %v565_v13 }
  0xad   :  { %v638_v23 = vsel %vm492_vm7, %v403_v11, %v566_v16 }
  0xaf   :  { %v305_v12 = vpop.f32.mrf.mxu0 }
  0xb0   :  { %v306_v14 = vadd.f32 %v305_v12, %v2331_v51  ;;  %v404_v15 = vpop.f32.mrf.mxu1 }
  0xb1   :  { %v405_v17 = vadd.f32 %v404_v15, %v2333_v53 }
  0xb2   :  { %v567_v18 = vmul.f32 %v2338_v55, %v306_v14  ;;  %vm493_vm8 = vcmp.gt.f32.partialorder %v306_v14, 0.0 }
  0xb3   :  { %vm494_vm9 = vcmp.gt.f32.partialorder %v405_v17, 0.0  ;;  %v568_v19 = vmul.f32 %v2338_v55, %v405_v17 }
  0xb4   :  { %v639_v21 = vsel %vm493_vm8, %v306_v14, %v567_v18  ;;  %v2069_v14 = vld [vmem:[%s2967_s0 + $0x58] sm:$0xff] }
  0xb5   :  { %v707_v22 = vpack.c.bf16 %v639_v21, %v637_v20  ;;  %v640_v24 = vsel %vm494_vm9, %v405_v17, %v568_v19 }
  0xb6   :  { %v708_v25 = vpack.c.bf16 %v640_v24, %v638_v23 }
  0xb7   :  { %v308_v27 = vpop.f32.mrf.mxu0  ;;  %933 = vmatmul.bf16.gmra.mxu2 %v707_v22 }
  0xb8   :  { %v407_v28 = vpop.f32.mrf.mxu1  ;;  %2041 = vmatmul.msk.bf16.gmra.mxu3 %vm865_vm5, %v708_v25  ;;  %v309_v29 = vadd.f32 %v308_v27, %v2331_v51 }
  0xb9   :  { %v408_v30 = vadd.f32 %v407_v28, %v2333_v53 }
  0xba   :  { %1954 = vmatmul.msk.bf16.gmra.mxu0 %vm234_vm0, %v2068_v26  ;;  %v569_v32 = vmul.f32 %v2338_v55, %v309_v29  ;;  %vm495_vm10 = vcmp.gt.f32.partialorder %v309_v29, 0.0 }
  0xbb   :  { %1972 = vmatmul.msk.bf16.gmra.mxu1 %vm234_vm0, %v2068_v26  ;;  %v570_v35 = vmul.f32 %v2338_v55, %v408_v30  ;;  %vm496_vm11 = vcmp.gt.f32.partialorder %v408_v30, 0.0 }
  0xbc   :  { %v641_v39 = vsel %vm495_vm10, %v309_v29, %v569_v32 }
  0xbd   :  { %v642_v42 = vsel %vm496_vm11, %v408_v30, %v570_v35 }
  0xbf   :  { %v310_v31 = vpop.f32.mrf.mxu0 }
  0xc0   :  { %v311_v33 = vadd.f32 %v310_v31, %v2331_v51  ;;  %v409_v34 = vpop.f32.mrf.mxu1 }
  0xc1   :  { %v410_v36 = vadd.f32 %v409_v34, %v2333_v53 }
  0xc2   :  { %v571_v37 = vmul.f32 %v2338_v55, %v311_v33  ;;  %vm497_vm12 = vcmp.gt.f32.partialorder %v311_v33, 0.0 }
  0xc3   :  { %vm498_vm13 = vcmp.gt.f32.partialorder %v410_v36, 0.0  ;;  %v572_v38 = vmul.f32 %v2338_v55, %v410_v36 }
  0xc4   :  { %v643_v40 = vsel %vm497_vm12, %v311_v33, %v571_v37  ;;  %v2070_v33 = vld [vmem:[%s2967_s0 + $0x60] sm:$0xff] }
  0xc5   :  { %v709_v41 = vpack.c.bf16 %v643_v40, %v641_v39  ;;  %v644_v43 = vsel %vm498_vm13, %v410_v36, %v572_v38 }
  0xc6   :  { %v710_v44 = vpack.c.bf16 %v644_v43, %v642_v42 }
  0xc7   :  { %v313_v45 = vpop.f32.mrf.mxu0  ;;  %938 = vmatmul.bf16.gmra.mxu2 %v709_v41 }
  0xc8   :  { %v412_v46 = vpop.f32.mrf.mxu1  ;;  %2042 = vmatmul.msk.bf16.gmra.mxu3 %vm865_vm5, %v710_v44  ;;  %v314_v47 = vadd.f32 %v313_v45, %v2331_v51 }
  0xc9   :  { %v413_v48 = vadd.f32 %v412_v46, %v2333_v53 }
  0xca   :  { %v573_v50 = vmul.f32 %v2338_v55, %v314_v47  ;;  %vm499_vm14 = vcmp.gt.f32.partialorder %v314_v47, 0.0  ;;  %1955 = vmatmul.msk.bf16.gmra.mxu0 %vm234_vm0, %v2069_v14 }
  0xcb   :  { %v574_v56 = vmul.f32 %v2338_v55, %v413_v48  ;;  %vm500_vm15 = vcmp.gt.f32.partialorder %v413_v48, 0.0  ;;  %1973 = vmatmul.msk.bf16.gmra.mxu1 %vm234_vm0, %v2069_v14 }
  0xcc   :  { %v645_v60 = vsel %vm499_vm14, %v314_v47, %v573_v50 }
  0xcd   :  { %v646_v63 = vsel %vm500_vm15, %v413_v48, %v574_v56 }
  0xcf   :  { %v315_v49 = vpop.f32.mrf.mxu0 }
  0xd0   :  { %v316_v52 = vadd.f32 %v315_v49, %v2331_v51  ;;  %v414_v54 = vpop.f32.mrf.mxu1 }
  0xd1   :  { %v415_v57 = vadd.f32 %v414_v54, %v2333_v53 }
  0xd2   :  { %v575_v58 = vmul.f32 %v2338_v55, %v316_v52  ;;  %vm501_vm1 = vcmp.gt.f32.partialorder %v316_v52, 0.0 }
  0xd3   :  { %vm502_vm2 = vcmp.gt.f32.partialorder %v415_v57, 0.0  ;;  %v576_v59 = vmul.f32 %v2338_v55, %v415_v57 }
  0xd4   :  { %v647_v61 = vsel %vm501_vm1, %v316_v52, %v575_v58 }
  0xd5   :  { %v711_v62 = vpack.c.bf16 %v647_v61, %v645_v60  ;;  %v648_v0 = vsel %vm502_vm2, %v415_v57, %v576_v59 }
  0xd6   :  { %v712_v1 = vpack.c.bf16 %v648_v0, %v646_v63 }
  0xd7   :  { %v318_v2 = vpop.f32.mrf.mxu0  ;;  %943 = vmatmul.bf16.gmra.mxu2 %v711_v62 }
  0xd8   :  { %v417_v3 = vpop.f32.mrf.mxu1  ;;  %2043 = vmatmul.msk.bf16.gmra.mxu3 %vm865_vm5, %v712_v1  ;;  %v319_v4 = vadd.f32 %v318_v2, %v2331_v51 }
  0xd9   :  { %v418_v5 = vadd.f32 %v417_v3, %v2333_v53 }
  0xda   :  { %v577_v7 = vmul.f32 %v2338_v55, %v319_v4  ;;  %vm503_vm3 = vcmp.gt.f32.partialorder %v319_v4, 0.0  ;;  %1956 = vmatmul.msk.bf16.gmra.mxu0 %vm234_vm0, %v2070_v33 }
  0xdb   :  { %v578_v10 = vmul.f32 %v2338_v55, %v418_v5  ;;  %vm504_vm4 = vcmp.gt.f32.partialorder %v418_v5, 0.0  ;;  %1974 = vmatmul.msk.bf16.gmra.mxu1 %vm234_vm0, %v2070_v33  ;;  %v2442_v33 = vld [vmem:[%s2971_s4] ss:$0 sm:$0xff] }
  0xdc   :  { %v649_v15 = vsel %vm503_vm3, %v319_v4, %v577_v7 }
  0xdd   :  { %v650_v18 = vsel %vm504_vm4, %v418_v5, %v578_v10 }
  0xdf   :  { %v320_v6 = vpop.f32.mrf.mxu0 }
  0xe0   :  { %v321_v8 = vadd.f32 %v320_v6, %v2331_v51  ;;  %v419_v9 = vpop.f32.mrf.mxu1 }
  0xe1   :  { %v420_v11 = vadd.f32 %v419_v9, %v2333_v53 }
  0xe2   :  { %v579_v12 = vmul.f32 %v2338_v55, %v321_v8  ;;  %vm505_vm6 = vcmp.gt.f32.partialorder %v321_v8, 0.0 }
  0xe3   :  { %vm506_vm7 = vcmp.gt.f32.partialorder %v420_v11, 0.0  ;;  %v580_v13 = vmul.f32 %v2338_v55, %v420_v11 }
  0xe4   :  { %v651_v16 = vsel %vm505_vm6, %v321_v8, %v579_v12 }
  0xe5   :  { %v713_v17 = vpack.c.bf16 %v651_v16, %v649_v15  ;;  %v652_v19 = vsel %vm506_vm7, %v420_v11, %v580_v13 }
  0xe6   :  { %v714_v20 = vpack.c.bf16 %v652_v19, %v650_v18 }
  0xe7   :  { %v323_v21 = vpop.f32.mrf.mxu0  ;;  %948 = vmatmul.bf16.gmra.mxu2 %v713_v17 }
  0xe8   :  { %v422_v22 = vpop.f32.mrf.mxu1  ;;  %2044 = vmatmul.msk.bf16.gmra.mxu3 %vm865_vm5, %v714_v20  ;;  %v324_v23 = vadd.f32 %v323_v21, %v2331_v51 }
  0xe9   :  { %v423_v24 = vadd.f32 %v422_v22, %v2333_v53 }
  0xea   :  { %v581_v26 = vmul.f32 %v2338_v55, %v324_v23  ;;  %vm507_vm8 = vcmp.gt.f32.partialorder %v324_v23, 0.0 }
  0xeb   :  { %v582_v29 = vmul.f32 %v2338_v55, %v423_v24  ;;  %vm508_vm9 = vcmp.gt.f32.partialorder %v423_v24, 0.0 }
  0xec   :  { %v653_v34 = vsel %vm507_vm8, %v324_v23, %v581_v26 }
  0xed   :  { %v654_v37 = vsel %vm508_vm9, %v423_v24, %v582_v29 }
  0xef   :  { %v325_v25 = vpop.f32.mrf.mxu0 }
  0xf0   :  { %v326_v27 = vadd.f32 %v325_v25, %v2331_v51  ;;  %v424_v28 = vpop.f32.mrf.mxu1 }
  0xf1   :  { %v425_v30 = vadd.f32 %v424_v28, %v2333_v53 }
  0xf2   :  { %v583_v31 = vmul.f32 %v2338_v55, %v326_v27  ;;  %vm509_vm10 = vcmp.gt.f32.partialorder %v326_v27, 0.0 }
  0xf3   :  { %vm510_vm11 = vcmp.gt.f32.partialorder %v425_v30, 0.0  ;;  %v584_v32 = vmul.f32 %v2338_v55, %v425_v30 }
  0xf4   :  { %v655_v35 = vsel %vm509_vm10, %v326_v27, %v583_v31 }
  0xf5   :  { %v715_v36 = vpack.c.bf16 %v655_v35, %v653_v34  ;;  %v656_v38 = vsel %vm510_vm11, %v425_v30, %v584_v32 }
  0xf6   :  { %v716_v39 = vpack.c.bf16 %v656_v38, %v654_v37 }
  0xf7   :  { %v328_v40 = vpop.f32.mrf.mxu0  ;;  %953 = vmatmul.bf16.gmra.mxu2 %v715_v36 }
  0xf8   :  { %v427_v41 = vpop.f32.mrf.mxu1  ;;  %2045 = vmatmul.msk.bf16.gmra.mxu3 %vm865_vm5, %v716_v39  ;;  %v329_v42 = vadd.f32 %v328_v40, %v2331_v51 }
  0xf9   :  { %v428_v43 = vadd.f32 %v427_v41, %v2333_v53  ;;  %v2071_v41 = vld [vmem:[%s2967_s0 + $0x68] sm:$0xff] }
  0xfa   :  { %v585_v45 = vmul.f32 %v2338_v55, %v329_v42  ;;  %vm511_vm12 = vcmp.gt.f32.partialorder %v329_v42, 0.0  ;;  %1957 = vmatmul.msk.bf16.gmra.mxu0 %vm234_vm0, %v2071_v41  ;;  %1975 = vmatmul.msk.bf16.gmra.mxu1 %vm234_vm0, %v2071_v41 }
  0xfb   :  { %v586_v48 = vmul.f32 %v2338_v55, %v428_v43  ;;  %vm512_vm13 = vcmp.gt.f32.partialorder %v428_v43, 0.0 }
  0xfc   :  { %v657_v54 = vsel %vm511_vm12, %v329_v42, %v585_v45  ;;  %v2451_v42 = vstv %s1154_s21 }
  0xfd   :  { %v658_v58 = vsel %vm512_vm13, %v428_v43, %v586_v48  ;;  %vm1268_vm13 = vcmask 490496  }
  0xff   :  { %v330_v44 = vpop.f32.mrf.mxu0 }
 0x100   :  { %v331_v46 = vadd.f32 %v330_v44, %v2331_v51  ;;  %v429_v47 = vpop.f32.mrf.mxu1  ;;  %v2458_v44 = vld [vmem:[%s2972_s5] ss:$0 sm:$0xff] }
 0x101   :  { %v430_v49 = vadd.f32 %v429_v47, %v2333_v53 }
 0x102   :  { %v587_v50 = vmul.f32 %v2338_v55, %v331_v46  ;;  %vm513_vm14 = vcmp.gt.f32.partialorder %v331_v46, 0.0 }
 0x103   :  { %vm514_vm15 = vcmp.gt.f32.partialorder %v430_v49, 0.0  ;;  %v588_v52 = vmul.f32 %v2338_v55, %v430_v49 }
 0x104   :  { %v659_v56 = vsel %vm513_vm14, %v331_v46, %v587_v50 }
 0x105   :  { %v717_v57 = vpack.c.bf16 %v659_v56, %v657_v54  ;;  %v660_v59 = vsel %vm514_vm15, %v430_v49, %v588_v52 }
 0x106   :  { %v718_v60 = vpack.c.bf16 %v660_v59, %v658_v58 }
 0x107   :  { %v333_v61 = vpop.f32.mrf.mxu0  ;;  %958 = vmatmul.bf16.gmra.mxu2 %v717_v57 }
 0x108   :  { %v432_v62 = vpop.f32.mrf.mxu1  ;;  %2046 = vmatmul.msk.bf16.gmra.mxu3 %vm865_vm5, %v718_v60  ;;  %v334_v63 = vadd.f32 %v333_v61, %v2331_v51 }
 0x109   :  { %v433_v0 = vadd.f32 %v432_v62, %v2333_v53 }
 0x10a   :  { %v589_v2 = vmul.f32 %v2338_v55, %v334_v63  ;;  %vm515_vm1 = vcmp.gt.f32.partialorder %v334_v63, 0.0 }
 0x10b   :  { %v590_v5 = vmul.f32 %v2338_v55, %v433_v0  ;;  %vm516_vm2 = vcmp.gt.f32.partialorder %v433_v0, 0.0 }
 0x10c   :  { %v661_v9 = vsel %vm515_vm1, %v334_v63, %v589_v2 }
 0x10d   :  { %v662_v12 = vsel %vm516_vm2, %v433_v0, %v590_v5 }
 0x10f   :  { %v335_v1 = vpop.f32.mrf.mxu0 }
 0x110   :  { %v336_v3 = vadd.f32 %v335_v1, %v2331_v51  ;;  %v434_v4 = vpop.f32.mrf.mxu1 }
 0x111   :  { %v435_v6 = vadd.f32 %v434_v4, %v2333_v53 }
 0x112   :  { %v591_v7 = vmul.f32 %v2338_v55, %v336_v3  ;;  %vm517_vm3 = vcmp.gt.f32.partialorder %v336_v3, 0.0 }
 0x113   :  { %vm518_vm4 = vcmp.gt.f32.partialorder %v435_v6, 0.0  ;;  %v592_v8 = vmul.f32 %v2338_v55, %v435_v6 }
 0x114   :  { %v663_v10 = vsel %vm517_vm3, %v336_v3, %v591_v7 }
 0x115   :  { %v719_v11 = vpack.c.bf16 %v663_v10, %v661_v9  ;;  %v664_v13 = vsel %vm518_vm4, %v435_v6, %v592_v8 }
 0x116   :  { %v720_v14 = vpack.c.bf16 %v664_v13, %v662_v12 }
 0x117   :  { %v338_v15 = vpop.f32.mrf.mxu0  ;;  %963 = vmatmul.bf16.gmra.mxu2 %v719_v11 }
 0x118   :  { %v437_v16 = vpop.f32.mrf.mxu1  ;;  %2047 = vmatmul.msk.bf16.gmra.mxu3 %vm865_vm5, %v720_v14  ;;  %v339_v17 = vadd.f32 %v338_v15, %v2331_v51 }
 0x119   :  { %v438_v18 = vadd.f32 %v437_v16, %v2333_v53 }
 0x11a   :  { %v593_v20 = vmul.f32 %v2338_v55, %v339_v17  ;;  %vm519_vm6 = vcmp.gt.f32.partialorder %v339_v17, 0.0 }
 0x11b   :  { %v594_v23 = vmul.f32 %v2338_v55, %v438_v18  ;;  %vm520_vm7 = vcmp.gt.f32.partialorder %v438_v18, 0.0 }
 0x11c   :  { %v665_v27 = vsel %vm519_vm6, %v339_v17, %v593_v20 }
 0x11d   :  { %v666_v30 = vsel %vm520_vm7, %v438_v18, %v594_v23 }
 0x11f   :  { %v340_v19 = vpop.f32.mrf.mxu0 }
 0x120   :  { %v341_v21 = vadd.f32 %v340_v19, %v2331_v51  ;;  %v439_v22 = vpop.f32.mrf.mxu1 }
 0x121   :  { %v440_v24 = vadd.f32 %v439_v22, %v2333_v53 }
 0x122   :  { %v595_v25 = vmul.f32 %v2338_v55, %v341_v21  ;;  %vm521_vm8 = vcmp.gt.f32.partialorder %v341_v21, 0.0 }
 0x123   :  { %vm522_vm9 = vcmp.gt.f32.partialorder %v440_v24, 0.0  ;;  %v596_v26 = vmul.f32 %v2338_v55, %v440_v24 }
 0x124   :  { %v667_v28 = vsel %vm521_vm8, %v341_v21, %v595_v25 }
 0x125   :  { %v721_v29 = vpack.c.bf16 %v667_v28, %v665_v27  ;;  %v668_v31 = vsel %vm522_vm9, %v440_v24, %v596_v26 }
 0x126   :  { %v722_v32 = vpack.c.bf16 %v668_v31, %v666_v30 }
 0x127   :  { %968 = vmatmul.bf16.gmra.mxu2 %v721_v29  ;;  %v343_v34 = vpop.f32.mrf.mxu0 }
 0x128   :  { %2048 = vmatmul.msk.bf16.gmra.mxu3 %vm865_vm5, %v722_v32  ;;  %v442_v35 = vpop.f32.mrf.mxu1  ;;  %v344_v37 = vadd.f32 %v343_v34, %v2331_v51 }
 0x129   :  { %v443_v40 = vadd.f32 %v442_v35, %v2333_v53 }
 0x12a   :  { %v929_v36 = vpop.f32.mrf.mxu2  ;;  %v597_v45 = vmul.f32 %v2338_v55, %v344_v37  ;;  %vm523_vm11 = vcmp.gt.f32.partialorder %v344_v37, 0.0 }
 0x12b   :  { %v930_v38 = vadd.f32 %v2442_v33, %v929_v36  ;;  %v1028_v39 = vpop.f32.mrf.mxu3  ;;  %v598_v47 = vmul.f32 %v2338_v55, %v443_v40  ;;  %vm524_vm12 = vcmp.gt.f32.partialorder %v443_v40, 0.0 }
 0x12c   :  { %v669_v59 = vsel %vm523_vm11, %v344_v37, %v597_v45 }
 0x12d   :  { %v1029_v43 = vadd.f32 %v1028_v39, %v930_v38  ;;  %v670_v63 = vsel %vm524_vm12, %v443_v40, %v598_v47 }
 0x12f   :  { %v1156_v46 = vmul.f32 %v2451_v42, %v1029_v43  ;;  %vm1118_vm10 = vcmp.gt.f32.partialorder %v1029_v43, 0.0  ;;  %v345_v48 = vpop.f32.mrf.mxu0 }
 0x130   :  { %v346_v49 = vadd.f32 %v345_v48, %v2331_v51  ;;  %v444_v50 = vpop.f32.mrf.mxu1 }
 0x131   :  { %v1192_v52 = vsel %vm1118_vm10, %v1029_v43, %v1156_v46  ;;  %v445_v54 = vadd.f32 %v444_v50, %v2333_v53 }
 0x132   :  { %v931_v56 = vpop.f32.mrf.mxu2  ;;  %v1232_v57 = vmul.f32 %v2458_v44, %v1192_v52  ;;  %v599_v58 = vmul.f32 %v2338_v55, %v346_v49  ;;  %vm525_vm14 = vcmp.gt.f32.partialorder %v346_v49, 0.0 }
 0x133   :  { %v932_v60 = vadd.f32 %v2442_v33, %v931_v56  ;;  %v1030_v61 = vpop.f32.mrf.mxu3  ;;  %vm526_vm15 = vcmp.gt.f32.partialorder %v445_v54, 0.0  ;;  %v600_v62 = vmul.f32 %v2338_v55, %v445_v54 }
 0x134   :  { %v1269_v0 = vsel %vm1268_vm13, %v1232_v57, 0.0  ;;  %v671_v1 = vsel %vm525_vm14, %v346_v49, %v599_v58 }
 0x135   :  { %v1031_v2 = vadd.f32 %v1030_v61, %v932_v60  ;;  %1270 = vadd.xlane.f32.xlu0 %v1269_v0  ;;  %v723_v3 = vpack.c.bf16 %v671_v1, %v669_v59  ;;  %v672_v4 = vsel %vm526_vm15, %v445_v54, %v600_v62 }
 0x136   :  { %v724_v5 = vpack.c.bf16 %v672_v4, %v670_v63 }
 0x137   :  { %v1157_v6 = vmul.f32 %v2451_v42, %v1031_v2  ;;  %vm1119_vm1 = vcmp.gt.f32.partialorder %v1031_v2, 0.0  ;;  %v348_v7 = vpop.f32.mrf.mxu0  ;;  %973 = vmatmul.bf16.gmra.mxu2 %v723_v3 }
 0x138   :  { %v447_v8 = vpop.f32.mrf.mxu1  ;;  %2049 = vmatmul.msk.bf16.gmra.mxu3 %vm865_vm5, %v724_v5  ;;  %v349_v12 = vadd.f32 %v348_v7, %v2331_v51  ;;  %v2072_v7 = vld [vmem:[%s2967_s0 + $0x70] sm:$0xff] }
 0x139   :  { %v1193_v9 = vsel %vm1119_vm1, %v1031_v2, %v1157_v6  ;;  %v448_v15 = vadd.f32 %v447_v8, %v2333_v53  ;;  %1958 = vmatmul.msk.bf16.gmra.mxu0 %vm234_vm0, %v2072_v7  ;;  %1976 = vmatmul.msk.bf16.gmra.mxu1 %vm234_vm0, %v2072_v7 }
 0x13a   :  { %v934_v10 = vpop.f32.mrf.mxu2  ;;  %v1233_v11 = vmul.f32 %v2458_v44, %v1193_v9  ;;  %v601_v18 = vmul.f32 %v2338_v55, %v349_v12  ;;  %vm527_vm3 = vcmp.gt.f32.partialorder %v349_v12, 0.0 }
 0x13b   :  { %v935_v13 = vadd.f32 %v2442_v33, %v934_v10  ;;  %v1033_v14 = vpop.f32.mrf.mxu3  ;;  %v602_v20 = vmul.f32 %v2338_v55, %v448_v15  ;;  %vm528_vm4 = vcmp.gt.f32.partialorder %v448_v15, 0.0 }
 0x13c   :  { %v1272_v16 = vsel %vm1268_vm13, %v1233_v11, 0.0  ;;  %v673_v29 = vsel %vm527_vm3, %v349_v12, %v601_v18 }
 0x13d   :  { %v1034_v17 = vadd.f32 %v1033_v14, %v935_v13  ;;  %1273 = vadd.xlane.f32.xlu0 %v1272_v16  ;;  %v674_v34 = vsel %vm528_vm4, %v448_v15, %v602_v20 }
 0x13f   :  { %v1158_v19 = vmul.f32 %v2451_v42, %v1034_v17  ;;  %vm1120_vm2 = vcmp.gt.f32.partialorder %v1034_v17, 0.0  ;;  %v350_v21 = vpop.f32.mrf.mxu0 }
 0x140   :  { %v351_v22 = vadd.f32 %v350_v21, %v2331_v51  ;;  %v449_v23 = vpop.f32.mrf.mxu1 }
 0x141   :  { %v1194_v24 = vsel %vm1120_vm2, %v1034_v17, %v1158_v19  ;;  %v450_v25 = vadd.f32 %v449_v23, %v2333_v53 }
 0x142   :  { %v936_v26 = vpop.f32.mrf.mxu2  ;;  %v1234_v27 = vmul.f32 %v2458_v44, %v1194_v24  ;;  %v603_v28 = vmul.f32 %v2338_v55, %v351_v22  ;;  %vm529_vm6 = vcmp.gt.f32.partialorder %v351_v22, 0.0 }
 0x143   :  { %v937_v30 = vadd.f32 %v2442_v33, %v936_v26  ;;  %v1035_v31 = vpop.f32.mrf.mxu3  ;;  %vm530_vm7 = vcmp.gt.f32.partialorder %v450_v25, 0.0  ;;  %v604_v32 = vmul.f32 %v2338_v55, %v450_v25 }
 0x144   :  { %v1275_v35 = vsel %vm1268_vm13, %v1234_v27, 0.0  ;;  %v675_v36 = vsel %vm529_vm6, %v351_v22, %v603_v28 }
 0x145   :  { %v1036_v37 = vadd.f32 %v1035_v31, %v937_v30  ;;  %1276 = vadd.xlane.f32.xlu1 %v1275_v35  ;;  %v725_v38 = vpack.c.bf16 %v675_v36, %v673_v29  ;;  %v676_v39 = vsel %vm530_vm7, %v450_v25, %v604_v32  ;;  %v2073_v36 = vld [vmem:[%s2967_s0 + $0x78] sm:$0xff] }
 0x146   :  { %v726_v40 = vpack.c.bf16 %v676_v39, %v674_v34 }
 0x147   :  { %v1159_v41 = vmul.f32 %v2451_v42, %v1036_v37  ;;  %vm1121_vm8 = vcmp.gt.f32.partialorder %v1036_v37, 0.0  ;;  %978 = vmatmul.bf16.gmra.mxu2 %v725_v38  ;;  %v353_v14 = vpop.f32.mrf.mxu0 }
 0x148   :  { %2050 = vmatmul.msk.bf16.gmra.mxu3 %vm865_vm5, %v726_v40  ;;  %v452_v16 = vpop.f32.mrf.mxu1  ;;  %v354_v19 = vadd.f32 %v353_v14, %v2331_v51 }
 0x149   :  { %v1195_v43 = vsel %vm1121_vm8, %v1036_v37, %v1159_v41  ;;  %v453_v22 = vadd.f32 %v452_v16, %v2333_v53  ;;  %1959 = vmatmul.msk.bf16.gmra.mxu0 %vm234_vm0, %v2073_v36  ;;  %1977 = vmatmul.msk.bf16.gmra.mxu1 %vm234_vm0, %v2073_v36 }
 0x14a   :  { %v939_v45 = vpop.f32.mrf.mxu2  ;;  %v1235_v46 = vmul.f32 %v2458_v44, %v1195_v43  ;;  %v605_v28 = vmul.f32 %v2338_v55, %v354_v19  ;;  %vm531_vm1 = vcmp.gt.f32.partialorder %v354_v19, 0.0 }
 0x14b   :  { %v940_v47 = vadd.f32 %v2442_v33, %v939_v45  ;;  %v1038_v48 = vpop.f32.mrf.mxu3  ;;  %v606_v30 = vmul.f32 %v2338_v55, %v453_v22  ;;  %vm532_vm15 = vcmp.gt.f32.partialorder %v453_v22, 0.0 }
 0x14c   :  { %v1278_v49 = vsel %vm1268_vm13, %v1235_v46, 0.0  ;;  %v677_v39 = vsel %vm531_vm1, %v354_v19, %v605_v28 }
 0x14d   :  { %v1039_v50 = vadd.f32 %v1038_v48, %v940_v47  ;;  %1279 = vadd.xlane.f32.xlu1 %v1278_v49  ;;  %v678_v48 = vsel %vm532_vm15, %v453_v22, %v606_v30 }
 0x14f   :  { %v1160_v52 = vmul.f32 %v2451_v42, %v1039_v50  ;;  %vm1122_vm9 = vcmp.gt.f32.partialorder %v1039_v50, 0.0  ;;  %v355_v26 = vpop.f32.mrf.mxu0 }
 0x150   :  { %v356_v29 = vadd.f32 %v355_v26, %v2331_v51  ;;  %v454_v31 = vpop.f32.mrf.mxu1 }
 0x151   :  { %v1196_v54 = vsel %vm1122_vm9, %v1039_v50, %v1160_v52  ;;  %v455_v35 = vadd.f32 %v454_v31, %v2333_v53 }
 0x152   :  { %v941_v56 = vpop.f32.mrf.mxu2  ;;  %v1236_v57 = vmul.f32 %v2458_v44, %v1196_v54  ;;  %v607_v34 = vmul.f32 %v2338_v55, %v356_v29  ;;  %vm533_vm2 = vcmp.gt.f32.partialorder %v356_v29, 0.0 }
 0x153   :  { %v942_v58 = vadd.f32 %v2442_v33, %v941_v56  ;;  %v1040_v59 = vpop.f32.mrf.mxu3  ;;  %vm534_vm3 = vcmp.gt.f32.partialorder %v455_v35, 0.0  ;;  %v608_v38 = vmul.f32 %v2338_v55, %v455_v35 }
 0x154   :  { %v1281_v60 = vsel %vm1268_vm13, %v1236_v57, 0.0  ;;  %v679_v43 = vsel %vm533_vm2, %v356_v29, %v607_v34 }
 0x155   :  { %v1041_v61 = vadd.f32 %v1040_v59, %v942_v58  ;;  %1282 = vadd.xlane.f32.xlu2 %v1281_v60  ;;  %v727_v47 = vpack.c.bf16 %v679_v43, %v677_v39  ;;  %v680_v49 = vsel %vm534_vm3, %v455_v35, %v608_v38 }
 0x156   :  { %v728_v54 = vpack.c.bf16 %v680_v49, %v678_v48 }
 0x157   :  { %v1161_v62 = vmul.f32 %v2451_v42, %v1041_v61  ;;  %vm1123_vm10 = vcmp.gt.f32.partialorder %v1041_v61, 0.0  ;;  %v358_v52 = vpop.f32.mrf.mxu0  ;;  %983 = vmatmul.bf16.gmra.mxu2 %v727_v47 }
 0x158   :  { %v457_v57 = vpop.f32.mrf.mxu1  ;;  %2051 = vmatmul.msk.bf16.gmra.mxu3 %vm865_vm5, %v728_v54  ;;  %v359_v60 = vadd.f32 %v358_v52, %v2331_v51 }
 0x159   :  { %v1197_v63 = vsel %vm1123_vm10, %v1041_v61, %v1161_v62  ;;  %v458_v61 = vadd.f32 %v457_v57, %v2333_v53 }
 0x15a   :  { %v944_v0 = vpop.f32.mrf.mxu2  ;;  %v1237_v1 = vmul.f32 %v2458_v44, %v1197_v63  ;;  %vm535_vm6 = vcmp.gt.f32.partialorder %v359_v60, 0.0 }
 0x15b   :  { %v945_v2 = vadd.f32 %v2442_v33, %v944_v0  ;;  %v1043_v3 = vpop.f32.mrf.mxu3  ;;  %vm536_vm7 = vcmp.gt.f32.partialorder %v458_v61, 0.0 }
 0x15c   :  { %v1284_v4 = vsel %vm1268_vm13, %v1237_v1, 0.0 }
 0x15d   :  { %v1044_v5 = vadd.f32 %v1043_v3, %v945_v2  ;;  %1285 = vadd.xlane.f32.xlu2 %v1284_v4 }
 0x15f   :  { %vm1124_vm11 = vcmp.gt.f32.partialorder %v1044_v5, 0.0  ;;  %v1162_v6 = vmul.f32 %v2451_v42, %v1044_v5  ;;  %v360_v3 = vpop.f32.mrf.mxu0 }
 0x160   :  { %v361_v7 = vadd.f32 %v360_v3, %v2331_v51 }
 0x161   :  { %v1198_v8 = vsel %vm1124_vm11, %v1044_v5, %v1162_v6  ;;  %v609_v5 = vmul.f32 %v2338_v55, %v359_v60  ;;  %v610_v6 = vmul.f32 %v2338_v55, %v458_v61 }
 0x162   :  { %v946_v9 = vpop.f32.mrf.mxu2  ;;  %v1238_v10 = vmul.f32 %v2458_v44, %v1198_v8  ;;  %v459_v8 = vpop.f32.mrf.mxu1  ;;  %vm537_vm9 = vcmp.gt.f32.partialorder %v361_v7, 0.0 }
 0x163   :  { %v947_v11 = vadd.f32 %v2442_v33, %v946_v9  ;;  %v1045_v12 = vpop.f32.mrf.mxu3  ;;  %v681_v14 = vsel %vm535_vm6, %v359_v60, %v609_v5 }
 0x164   :  { %v1287_v13 = vsel %vm1268_vm13, %v1238_v10, 0.0  ;;  %v611_v10 = vmul.f32 %v2338_v55, %v361_v7 }
 0x165   :  { %v1046_v15 = vadd.f32 %v1045_v12, %v947_v11  ;;  %1288 = vadd.xlane.f32.xlu0 %v1287_v13  ;;  %v460_v11 = vadd.f32 %v459_v8, %v2333_v53  ;;  %v682_v13 = vsel %vm536_vm7, %v458_v61, %v610_v6 }
 0x167   :  { %v1163_v17 = vmul.f32 %v2451_v42, %v1046_v15  ;;  %vm1125_vm12 = vcmp.gt.f32.partialorder %v1046_v15, 0.0  ;;  %vm538_vm10 = vcmp.gt.f32.partialorder %v460_v11, 0.0 }
 0x169   :  { %v1199_v18 = vsel %vm1125_vm12, %v1046_v15, %v1163_v17  ;;  %v683_v15 = vsel %vm537_vm9, %v361_v7, %v611_v10 }
 0x16a   :  { %v949_v20 = vpop.f32.mrf.mxu2  ;;  %v1239_v21 = vmul.f32 %v2458_v44, %v1199_v18  ;;  %v612_v18 = vmul.f32 %v2338_v55, %v460_v11  ;;  %v729_v19 = vpack.c.bf16 %v683_v15, %v681_v14 }
 0x16b   :  { %v950_v23 = vadd.f32 %v2442_v33, %v949_v20  ;;  %v1048_v24 = vpop.f32.mrf.mxu3 }
 0x16c   :  { %v1290_v25 = vsel %vm1268_vm13, %v1239_v21, 0.0  ;;  %988 = vmatmul.bf16.gmra.mxu2 %v729_v19 }
 0x16d   :  { %v1049_v27 = vadd.f32 %v1048_v24, %v950_v23  ;;  %1291 = vadd.xlane.f32.xlu1 %v1290_v25  ;;  %v684_v23 = vsel %vm538_vm10, %v460_v11, %v612_v18 }
 0x16e   :  { %v730_v25 = vpack.c.bf16 %v684_v23, %v682_v13 }
 0x16f   :  { %vm1126_vm14 = vcmp.gt.f32.partialorder %v1049_v27, 0.0  ;;  %v1164_v32 = vmul.f32 %v2451_v42, %v1049_v27 }
 0x170   :  { %2052 = vmatmul.msk.bf16.gmra.mxu3 %vm865_vm5, %v730_v25 }
 0x171   :  { %v1200_v37 = vsel %vm1126_vm14, %v1049_v27, %v1164_v32 }
 0x172   :  { %v951_v40 = vpop.f32.mrf.mxu2  ;;  %v1240_v41 = vmul.f32 %v2458_v44, %v1200_v37 }
 0x173   :  { %v952_v45 = vadd.f32 %v2442_v33, %v951_v40  ;;  %v1050_v46 = vpop.f32.mrf.mxu3 }
 0x174   :  { %v1293_v50 = vsel %vm1268_vm13, %v1240_v41, 0.0 }
 0x175   :  { %v1051_v56 = vadd.f32 %v1050_v46, %v952_v45  ;;  %1294 = vadd.xlane.f32.xlu2 %v1293_v50 }
 0x177   :  { %v1165_v58 = vmul.f32 %v2451_v42, %v1051_v56  ;;  %vm1127_vm4 = vcmp.gt.f32.partialorder %v1051_v56, 0.0  ;;  %v363_v6 = vpop.f32.mrf.mxu0 }
 0x178   :  { %v364_v14 = vadd.f32 %v363_v6, %v2331_v51 }
 0x179   :  { %v1201_v59 = vsel %vm1127_vm4, %v1051_v56, %v1165_v58  ;;  %v2130_v56 = vmov 0  }
 0x17a   :  { %v954_v62 = vpop.f32.mrf.mxu2  ;;  %v1241_v63 = vmul.f32 %v2458_v44, %v1201_v59  ;;  %2101 = vset.pattern.permute.xlu0 %v2130_v56  ;;  %2102 = vset.pattern.permute.xlu1 %v2130_v56  ;;  %vm539_vm4 = vcmp.gt.f32.partialorder %v364_v14, 0.0 }
 0x17b   :  { %v955_v0 = vadd.f32 %v2442_v33, %v954_v62  ;;  %v1053_v1 = vpop.f32.mrf.mxu3  ;;  %2103 = vset.pattern.permute.xlu2 %v2130_v56 }
 0x17c   :  { %v1296_v2 = vsel %vm1268_vm13, %v1241_v63, 0.0  ;;  %v2074_v63 = vld [vmem:[%s2967_s0 + $0x80] sm:$0xff] }
 0x17d   :  { %v1054_v4 = vadd.f32 %v1053_v1, %v955_v0  ;;  %1297 = vadd.xlane.f32.xlu0 %v1296_v2  ;;  %1960 = vmatmul.msk.bf16.gmra.mxu0 %vm234_vm0, %v2074_v63 }
 0x17e   :  { %1978 = vmatmul.msk.bf16.gmra.mxu1 %vm234_vm0, %v2074_v63 }
 0x17f   :  { %vm1128_vm8 = vcmp.gt.f32.partialorder %v1054_v4, 0.0  ;;  %v1166_v9 = vmul.f32 %v2451_v42, %v1054_v4  ;;  %v365_v19 = vpop.f32.mrf.mxu0 }
 0x181   :  { %v1202_v12 = vsel %vm1128_vm8, %v1054_v4, %v1166_v9  ;;  %v462_v9 = vpop.f32.mrf.mxu1 }
 0x182   :  { %v956_v16 = vpop.f32.mrf.mxu2  ;;  %v1242_v17 = vmul.f32 %v2458_v44, %v1202_v12  ;;  %v463_v12 = vadd.f32 %v462_v9, %v2333_v53 }
 0x183   :  { %v957_v20 = vadd.f32 %v2442_v33, %v956_v16  ;;  %v1055_v21 = vpop.f32.mrf.mxu3 }
 0x184   :  { %v1299_v22 = vsel %vm1268_vm13, %v1242_v17, 0.0  ;;  %v614_v18 = vmul.f32 %v2338_v55, %v463_v12  ;;  %vm540_vm3 = vcmp.gt.f32.partialorder %v463_v12, 0.0 }
 0x185   :  { %v1056_v24 = vadd.f32 %v1055_v21, %v957_v20  ;;  %1300 = vadd.xlane.f32.xlu1 %v1299_v22  ;;  %v613_v21 = vmul.f32 %v2338_v55, %v364_v14  ;;  %v366_v22 = vadd.f32 %v365_v19, %v2331_v51 }
 0x187   :  { %v1167_v26 = vmul.f32 %v2451_v42, %v1056_v24  ;;  %vm1129_vm11 = vcmp.gt.f32.partialorder %v1056_v24, 0.0  ;;  %vm541_vm6 = vcmp.gt.f32.partialorder %v366_v22, 0.0 }
 0x189   :  { %v1203_v27 = vsel %vm1129_vm11, %v1056_v24, %v1167_v26  ;;  %v464_v23 = vpop.f32.mrf.mxu1  ;;  %v2583_v24 = vld [vmem:[#allocation2] ss:$0 sm:$0xff] }
 0x18a   :  { %v959_v28 = vpop.f32.mrf.mxu2  ;;  %v1243_v29 = vmul.f32 %v2458_v44, %v1203_v27  ;;  %v465_v27 = vadd.f32 %v464_v23, %v2333_v53 }
 0x18b   :  { %v960_v30 = vadd.f32 %v2442_v33, %v959_v28  ;;  %v1058_v31 = vpop.f32.mrf.mxu3 }
 0x18c   :  { %v1302_v32 = vsel %vm1268_vm13, %v1243_v29, 0.0  ;;  %vm542_vm7 = vcmp.gt.f32.partialorder %v465_v27, 0.0 }
 0x18d   :  { %v1059_v34 = vadd.f32 %v1058_v31, %v960_v30  ;;  %1303 = vadd.xlane.f32.xlu2 %v1302_v32  ;;  %v615_v30 = vmul.f32 %v2338_v55, %v366_v22  ;;  %v686_v31 = vsel %vm540_vm3, %v463_v12, %v614_v18  ;;  %v616_v32 = vmul.f32 %v2338_v55, %v465_v27 }
 0x18f   :  { %vm1130_vm12 = vcmp.gt.f32.partialorder %v1059_v34, 0.0  ;;  %v1168_v35 = vmul.f32 %v2451_v42, %v1059_v34 }
 0x191   :  { %v1204_v36 = vsel %vm1130_vm12, %v1059_v34, %v1168_v35  ;;  %v685_v35 = vsel %vm539_vm4, %v364_v14, %v613_v21 }
 0x192   :  { %v961_v37 = vpop.f32.mrf.mxu2  ;;  %v1244_v38 = vmul.f32 %v2458_v44, %v1204_v36  ;;  %v687_v36 = vsel %vm541_vm6, %v366_v22, %v615_v30 }
 0x193   :  { %v962_v39 = vadd.f32 %v2442_v33, %v961_v37  ;;  %v1060_v40 = vpop.f32.mrf.mxu3 }
 0x194   :  { %v1305_v41 = vsel %vm1268_vm13, %v1244_v38, 0.0  ;;  %v688_v38 = vsel %vm542_vm7, %v465_v27, %v616_v32 }
 0x195   :  { %v1061_v43 = vadd.f32 %v1060_v40, %v962_v39  ;;  %1306 = vadd.xlane.f32.xlu0 %v1305_v41  ;;  %v731_v39 = vpack.c.bf16 %v687_v36, %v685_v35  ;;  %v2592_v40 = vstv %s1453_s1 }
 0x197   :  { %vm1131_vm14 = vcmp.gt.f32.partialorder %v1061_v43, 0.0  ;;  %v1169_v45 = vmul.f32 %v2451_v42, %v1061_v43  ;;  %993 = vmatmul.bf16.gmra.mxu2 %v731_v39 }
 0x199   :  { %v1205_v46 = vsel %vm1131_vm14, %v1061_v43, %v1169_v45  ;;  %v732_v43 = vpack.c.bf16 %v688_v38, %v686_v31 }
 0x19a   :  { %v964_v47 = vpop.f32.mrf.mxu2  ;;  %v1245_v48 = vmul.f32 %v2458_v44, %v1205_v46 }
 0x19b   :  { %v965_v49 = vadd.f32 %v2442_v33, %v964_v47  ;;  %v1063_v50 = vpop.f32.mrf.mxu3  ;;  %2053 = vmatmul.msk.bf16.gmra.mxu3 %vm865_vm5, %v732_v43 }
 0x19c   :  { %v1308_v52 = vsel %vm1268_vm13, %v1245_v48, 0.0 }
 0x19d   :  { %v1064_v54 = vadd.f32 %v1063_v50, %v965_v49  ;;  %1309 = vadd.xlane.f32.xlu1 %v1308_v52 }
 0x19f   :  { %vm1132_vm15 = vcmp.gt.f32.partialorder %v1064_v54, 0.0  ;;  %v1170_v57 = vmul.f32 %v2451_v42, %v1064_v54 }
 0x1a1   :  { %v1206_v58 = vsel %vm1132_vm15, %v1064_v54, %v1170_v57 }
 0x1a2   :  { %v966_v59 = vpop.f32.mrf.mxu2  ;;  %v1246_v60 = vmul.f32 %v2458_v44, %v1206_v58 }
 0x1a3   :  { %v967_v61 = vadd.f32 %v2442_v33, %v966_v59  ;;  %v1065_v62 = vpop.f32.mrf.mxu3 }
 0x1a4   :  { %v1311_v0 = vsel %vm1268_vm13, %v1246_v60, 0.0 }
 0x1a5   :  { %v1066_v1 = vadd.f32 %v1065_v62, %v967_v61  ;;  %1312 = vadd.xlane.f32.xlu2 %v1311_v0 }
 0x1a7   :  { %vm1133_vm1 = vcmp.gt.f32.partialorder %v1066_v1, 0.0  ;;  %v1171_v2 = vmul.f32 %v2451_v42, %v1066_v1 }
 0x1a8   :  { %v1271_v28 = vpop.xlane.xlu0 %1270 }
 0x1a9   :  { %v1207_v3 = vsel %vm1133_vm1, %v1066_v1, %v1171_v2  ;;  %v1381_v37 = vadd.f32 %v2583_v24, %v1271_v28 }
 0x1aa   :  { %v969_v4 = vpop.f32.mrf.mxu2  ;;  %v1247_v5 = vmul.f32 %v2458_v44, %v1207_v3 }
 0x1ab   :  { %v970_v7 = vadd.f32 %v2442_v33, %v969_v4  ;;  %v1068_v8 = vpop.f32.mrf.mxu3  ;;  %v1455_v46 = vmul.f32 %v2592_v40, %v1381_v37  ;;  %vm1417_vm9 = vcmp.gt.f32.partialorder %v1381_v37, 0.0 }
 0x1ac   :  { %v1314_v10 = vsel %vm1268_vm13, %v1247_v5, 0.0 }
 0x1ad   :  { %v1069_v11 = vadd.f32 %v1068_v8, %v970_v7  ;;  %1315 = vadd.xlane.f32.xlu0 %v1314_v10  ;;  %v1491_v49 = vsel %vm1417_vm9, %v1381_v37, %v1455_v46 }
 0x1af   :  { %vm1134_vm2 = vcmp.gt.f32.partialorder %v1069_v11, 0.0  ;;  %v1172_v13 = vmul.f32 %v2451_v42, %v1069_v11 }
 0x1b0   :  { %v1274_v52 = vpop.xlane.xlu0 %1273 }
 0x1b1   :  { %v1208_v15 = vsel %vm1134_vm2, %v1069_v11, %v1172_v13  ;;  %v1382_v54 = vadd.f32 %v2583_v24, %v1274_v52 }
 0x1b2   :  { %v971_v16 = vpop.f32.mrf.mxu2  ;;  %v1248_v17 = vmul.f32 %v2458_v44, %v1208_v15 }
 0x1b3   :  { %v972_v20 = vadd.f32 %v2442_v33, %v971_v16  ;;  %v1070_v25 = vpop.f32.mrf.mxu3  ;;  %v1456_v58 = vmul.f32 %v2592_v40, %v1382_v54  ;;  %vm1418_vm10 = vcmp.gt.f32.partialorder %v1382_v54, 0.0 }
 0x1b4   :  { %v1317_v26 = vsel %vm1268_vm13, %v1248_v17, 0.0 }
 0x1b5   :  { %v1071_v29 = vadd.f32 %v1070_v25, %v972_v20  ;;  %1318 = vadd.xlane.f32.xlu1 %v1317_v26  ;;  %v1492_v61 = vsel %vm1418_vm10, %v1382_v54, %v1456_v58 }
 0x1b6   :  { %v368_v11 = vpop.f32.mrf.mxu0  ;;  %v467_v14 = vpop.f32.mrf.mxu1 }
 0x1b7   :  { %vm1135_vm8 = vcmp.gt.f32.partialorder %v1071_v29, 0.0  ;;  %v1173_v34 = vmul.f32 %v2451_v42, %v1071_v29  ;;  %v369_v16 = vadd.f32 %v368_v11, %v2331_v51  ;;  %v468_v19 = vadd.f32 %v467_v14, %v2333_v53 }
 0x1b8   :  { %v1277_v57 = vpop.xlane.xlu1 %1276 }
 0x1b9   :  { %v1209_v41 = vsel %vm1135_vm8, %v1071_v29, %v1173_v34  ;;  %v1383_v60 = vadd.f32 %v2583_v24, %v1277_v57  ;;  %v617_v22 = vmul.f32 %v2338_v55, %v369_v16  ;;  %vm543_vm1 = vcmp.gt.f32.partialorder %v369_v16, 0.0 }
 0x1ba   :  { %v1249_v45 = vmul.f32 %v2458_v44, %v1209_v41  ;;  %v974_v48 = vpop.f32.mrf.mxu2  ;;  %v618_v27 = vmul.f32 %v2338_v55, %v468_v19  ;;  %vm544_vm3 = vcmp.gt.f32.partialorder %v468_v19, 0.0 }
 0x1bb   :  { %v1073_v50 = vpop.f32.mrf.mxu3  ;;  %v1457_v62 = vmul.f32 %v2592_v40, %v1383_v60  ;;  %vm1419_vm11 = vcmp.gt.f32.partialorder %v1383_v60, 0.0  ;;  %v975_v4 = vadd.f32 %v2442_v33, %v974_v48  ;;  %v689_v32 = vsel %vm543_vm1, %v369_v16, %v617_v22 }
 0x1bc   :  { %v1320_v47 = vsel %vm1268_vm13, %v1249_v45, 0.0  ;;  %v690_v38 = vsel %vm544_vm3, %v468_v19, %v618_v27 }
 0x1bd   :  { %1321 = vadd.xlane.f32.xlu2 %v1320_v47  ;;  %v1493_v2 = vsel %vm1419_vm11, %v1383_v60, %v1457_v62  ;;  %v1074_v7 = vadd.f32 %v1073_v50, %v975_v4 }
 0x1be   :  { %v370_v21 = vpop.f32.mrf.mxu0  ;;  %v469_v30 = vpop.f32.mrf.mxu1 }
 0x1bf   :  { %v1174_v12 = vmul.f32 %v2451_v42, %v1074_v7  ;;  %vm1136_vm14 = vcmp.gt.f32.partialorder %v1074_v7, 0.0  ;;  %v371_v23 = vadd.f32 %v370_v21, %v2331_v51  ;;  %v470_v31 = vadd.f32 %v469_v30, %v2333_v53 }
 0x1c0   :  { %v1280_v0 = vpop.xlane.xlu1 %1279 }
 0x1c1   :  { %1565 = vperm.xlu0 %2101, %v1491_v49   ;;  %v1384_v1 = vadd.f32 %v2583_v24, %v1280_v0  ;;  %v1210_v15 = vsel %vm1136_vm14, %v1074_v7, %v1174_v12  ;;  %vm545_vm2 = vcmp.gt.f32.partialorder %v371_v23, 0.0  ;;  %v619_v28 = vmul.f32 %v2338_v55, %v371_v23 }
 0x1c2   :  { %v976_v56 = vpop.f32.mrf.mxu2  ;;  %v1250_v20 = vmul.f32 %v2458_v44, %v1210_v15  ;;  %vm546_vm6 = vcmp.gt.f32.partialorder %v470_v31, 0.0  ;;  %v620_v39 = vmul.f32 %v2338_v55, %v470_v31 }
 0x1c3   :  { %v1075_v59 = vpop.f32.mrf.mxu3  ;;  %v1458_v5 = vmul.f32 %v2592_v40, %v1384_v1  ;;  %vm1420_vm12 = vcmp.gt.f32.partialorder %v1384_v1, 0.0  ;;  %v977_v17 = vadd.f32 %v2442_v33, %v976_v56  ;;  %v691_v34 = vsel %vm545_vm2, %v371_v23, %v619_v28 }
 0x1c4   :  { %v1323_v29 = vsel %vm1268_vm13, %v1250_v20, 0.0  ;;  %v733_v37 = vpack.c.bf16 %v691_v34, %v689_v32  ;;  %v692_v43 = vsel %vm546_vm6, %v470_v31, %v620_v39 }
 0x1c5   :  { %v1494_v8 = vsel %vm1420_vm12, %v1384_v1, %v1458_v5  ;;  %v1076_v25 = vadd.f32 %v1075_v59, %v977_v17  ;;  %v734_v48 = vpack.c.bf16 %v692_v43, %v690_v38 }
 0x1c6   :  { %v373_v41 = vpop.f32.mrf.mxu0  ;;  %998 = vmatmul.bf16.gmra.mxu2 %v733_v37  ;;  %v472_v49 = vpop.f32.mrf.mxu1 }
 0x1c7   :  { %v1175_v35 = vmul.f32 %v2451_v42, %v1076_v25  ;;  %vm1137_vm4 = vcmp.gt.f32.partialorder %v1076_v25, 0.0  ;;  %2054 = vmatmul.msk.bf16.gmra.mxu3 %vm865_vm5, %v734_v48  ;;  %v473_v54 = vadd.f32 %v472_v49, %v2333_v53  ;;  %v374_v56 = vadd.f32 %v373_v41, %v2331_v51 }
 0x1c8   :  { %v1283_v17 = vpop.xlane.xlu2 %1282 }
 0x1c9   :  { %v1211_v47 = vsel %vm1137_vm4, %v1076_v25, %v1175_v35  ;;  %v621_v62 = vmul.f32 %v2338_v55, %v374_v56  ;;  %vm548_vm8 = vcmp.gt.f32.partialorder %v473_v54, 0.0  ;;  %vm547_vm9 = vcmp.gt.f32.partialorder %v374_v56, 0.0 }
 0x1ca   :  { %v979_v63 = vpop.f32.mrf.mxu2  ;;  %v1251_v50 = vmul.f32 %v2458_v44, %v1211_v47  ;;  %v1385_v19 = vadd.f32 %v2583_v24, %v1283_v17 }
 0x1cb   :  { %v1078_v3 = vpop.f32.mrf.mxu3  ;;  %v980_v45 = vadd.f32 %v2442_v33, %v979_v63  ;;  %v693_v7 = vsel %vm547_vm9, %v374_v56, %v621_v62 }
 0x1cc   :  { %v1326_v58 = vsel %vm1268_vm13, %v1251_v50, 0.0  ;;  %v1459_v21 = vmul.f32 %v2592_v40, %v1385_v19 }
 0x1cd   :  { %v1079_v52 = vadd.f32 %v1078_v3, %v980_v45 }
 0x1ce   :  { %1570 = vperm.xlu1 %2102, %v1492_v61   ;;  %v375_v57 = vpop.f32.mrf.mxu0  ;;  %v622_v61 = vmul.f32 %v2338_v55, %v473_v54  ;;  %v474_v0 = vpop.f32.mrf.mxu1 }
 0x1cf   :  { %v376_v59 = vadd.f32 %v375_v57, %v2331_v51  ;;  %v1176_v60 = vmul.f32 %v2451_v42, %v1079_v52  ;;  %vm1138_vm7 = vcmp.gt.f32.partialorder %v1079_v52, 0.0 }
 0x1d0   :  { %v694_v4 = vsel %vm548_vm8, %v473_v54, %v622_v61  ;;  %v1286_v25 = vpop.xlane.xlu2 %1285 }
 0x1d1   :  { %v623_v63 = vmul.f32 %v2338_v55, %v376_v59  ;;  %vm549_vm10 = vcmp.gt.f32.partialorder %v376_v59, 0.0  ;;  %v1212_v3 = vsel %vm1138_vm7, %v1079_v52, %v1176_v60  ;;  %v1386_v30 = vadd.f32 %v2583_v24, %v1286_v25 }
 0x1d2   :  { %v981_v6 = vpop.f32.mrf.mxu2 }
 0x1d3   :  { %v982_v9 = vadd.f32 %v2442_v33, %v981_v6  ;;  %v1080_v10 = vpop.f32.mrf.mxu3  ;;  %v1460_v35 = vmul.f32 %v2592_v40, %v1386_v30 }
 0x1d5   :  { %1575 = vperm.xlu2 %2103, %v1493_v2   ;;  %v1081_v13 = vadd.f32 %v1080_v10, %v982_v9  ;;  %v475_v2 = vadd.f32 %v474_v0, %v2333_v53  ;;  %v2075_v9 = vld [vmem:[%s2967_s0 + $0x88] sm:$0xff]  ;;  %v1252_v10 = vmul.f32 %v2458_v44, %v1212_v3 }
 0x1d6   :  { %1961 = vmatmul.msk.bf16.gmra.mxu0 %vm234_vm0, %v2075_v9  ;;  %1979 = vmatmul.msk.bf16.gmra.mxu1 %vm234_vm0, %v2075_v9  ;;  %vm1421_vm0 = vcmp.gt.f32.partialorder %v1385_v19, 0.0 }
 0x1d7   :  { %v1177_v18 = vmul.f32 %v2451_v42, %v1081_v13  ;;  %vm1139_vm15 = vcmp.gt.f32.partialorder %v1081_v13, 0.0  ;;  %vm550_vm11 = vcmp.gt.f32.partialorder %v475_v2, 0.0  ;;  %v624_v5 = vmul.f32 %v2338_v55, %v475_v2 }
 0x1d8   :  { %v1329_v15 = vsel %vm1268_vm13, %v1252_v10, 0.0  ;;  %v1289_v22 = vpop.xlane.xlu0 %1288  ;;  %v1495_v27 = vsel %vm1421_vm0, %v1385_v19, %v1459_v21 }
 0x1d9   :  { %v1213_v26 = vsel %vm1139_vm15, %v1081_v13, %v1177_v18  ;;  %v696_v11 = vsel %vm550_vm11, %v475_v2, %v624_v5  ;;  %vm1422_vm15 = vcmp.gt.f32.partialorder %v1386_v30, 0.0 }
 0x1da   :  { %v1253_v36 = vmul.f32 %v2458_v44, %v1213_v26  ;;  %v736_v13 = vpack.c.bf16 %v696_v11, %v694_v4  ;;  %v984_v16 = vpop.f32.mrf.mxu2  ;;  %v1387_v26 = vadd.f32 %v2583_v24, %v1289_v22  ;;  %v1496_v38 = vsel %vm1422_vm15, %v1386_v30, %v1460_v35  ;;  %v1528_v22 = vld [vmem:[%s2974_s7 + $0x8] sm:$0xff] }
 0x1db   :  { %v1083_v20 = vpop.f32.mrf.mxu3 }
 0x1dc   :  { %v1332_v46 = vsel %vm1268_vm13, %v1253_v36, 0.0  ;;  %2055 = vmatmul.msk.bf16.gmra.mxu3 %vm865_vm5, %v736_v13  ;;  %vm1423_vm14 = vcmp.gt.f32.partialorder %v1387_v26, 0.0 }
 0x1dd   :  { %1580 = vperm.xlu2 %2103, %v1494_v8   ;;  %v695_v8 = vsel %vm549_vm10, %v376_v59, %v623_v63 }
 0x1de   :  { %v735_v12 = vpack.c.bf16 %v695_v8, %v693_v7 }
 0x1e0   :  { %v1292_v1 = vpop.xlane.xlu1 %1291  ;;  %1003 = vmatmul.bf16.gmra.mxu2 %v735_v12 }
 0x1e1   :  { %v1388_v6 = vadd.f32 %v2583_v24, %v1292_v1  ;;  %v985_v1 = vadd.f32 %v2442_v33, %v984_v16 }
 0x1e2   :  { %v986_v23 = vpop.f32.mrf.mxu2 }
 0x1e3   :  { %v1462_v14 = vmul.f32 %v2592_v40, %v1388_v6  ;;  %vm1424_vm12 = vcmp.gt.f32.partialorder %v1388_v6, 0.0  ;;  %v1085_v28 = vpop.f32.mrf.mxu3  ;;  %v1084_v9 = vadd.f32 %v1083_v20, %v985_v1  ;;  %v987_v10 = vadd.f32 %v2442_v33, %v986_v23  ;;  %v2696_v23 = vld [vmem:[%s2972_s5] ss:$0 sm:$0xff] }
 0x1e5   :  { %v1498_v18 = vsel %vm1424_vm12, %v1388_v6, %v1462_v14  ;;  %v1178_v14 = vmul.f32 %v2451_v42, %v1084_v9  ;;  %vm1140_vm7 = vcmp.gt.f32.partialorder %v1084_v9, 0.0 }
 0x1e7   :  { %v1214_v19 = vsel %vm1140_vm7, %v1084_v9, %v1178_v14 }
 0x1e8   :  { %v2650_v31 = vpop.xlane.xlu2 %1294  ;;  %v1254_v25 = vmul.f32 %v2696_v23, %v1214_v19 }
 0x1eb   :  { %1324 = vadd.xlane.f32.xlu0 %v1323_v29  ;;  %v1461_v29 = vmul.f32 %v2592_v40, %v1387_v26 }
 0x1ed   :  { %v1497_v32 = vsel %vm1423_vm14, %v1387_v26, %v1461_v29 }
 0x1ef   :  { %v989_v34 = vpop.f32.mrf.mxu2 }
 0x1f0   :  { %v990_v36 = vadd.f32 %v2442_v33, %v989_v34  ;;  %v2657_v47 = vpop.xlane.xlu0 %1297  ;;  %v1527_v33 = vld [vmem:[%s2974_s7] sm:$0xff]  ;;  %v1530_v34 = vld [vmem:[%s2974_s7 + $0x18] sm:$0xff] }
 0x1f3   :  { %1333 = vadd.xlane.f32.xlu0 %v1332_v46  ;;  %v1088_v37 = vpop.f32.mrf.mxu3 }
 0x1f4   :  { %v1089_v39 = vadd.f32 %v1088_v37, %v990_v36  ;;  %v1335_v36 = vsel %vm1268_vm13, %v1254_v25, 0.0 }
 0x1f6   :  { %v1180_v43 = vmul.f32 %v2451_v42, %v1089_v39  ;;  %vm1142_vm1 = vcmp.gt.f32.partialorder %v1089_v39, 0.0 }
 0x1f8   :  { %1327 = vadd.xlane.f32.xlu1 %v1326_v58  ;;  %v1216_v48 = vsel %vm1142_vm1, %v1089_v39, %v1180_v43  ;;  %v1301_v52 = vpop.xlane.xlu1 %1300 }
 0x1f9   :  { %v1256_v56 = vmul.f32 %v2458_v44, %v1216_v48  ;;  %v1391_v20 = vadd.f32 %v2583_v24, %v1301_v52 }
 0x1fa   :  { %v378_v45 = vpop.f32.mrf.mxu0 }
 0x1fb   :  { %v477_v46 = vpop.f32.mrf.mxu1  ;;  %v379_v49 = vadd.f32 %v378_v45, %v2331_v51  ;;  %v1341_v62 = vsel %vm1268_vm13, %v1256_v56, 0.0  ;;  %vm1427_vm9 = vcmp.gt.f32.partialorder %v1391_v20, 0.0 }
 0x1fc   :  { %v478_v50 = vadd.f32 %v477_v46, %v2333_v53 }
 0x1fd   :  { %v625_v57 = vmul.f32 %v2338_v55, %v379_v49  ;;  %vm551_vm2 = vcmp.gt.f32.partialorder %v379_v49, 0.0 }
 0x1fe   :  { %v626_v58 = vmul.f32 %v2338_v55, %v478_v50  ;;  %vm552_vm3 = vcmp.gt.f32.partialorder %v478_v50, 0.0 }
 0x1ff   :  { %v697_v44 = vsel %vm551_vm2, %v379_v49, %v625_v57 }
 0x200   :  { %v2654_v41 = vpop.xlane.xlu2 %1303  ;;  %v698_v2 = vsel %vm552_vm3, %v478_v50, %v626_v58  ;;  %v1090_v50 = vpop.f32.mrf.mxu3  ;;  %v1390_v58 = vadd.f32 %v2583_v24, %v2657_v47 }
 0x202   :  { %v380_v59 = vpop.f32.mrf.mxu0  ;;  %vm1426_vm10 = vcmp.gt.f32.partialorder %v1390_v58, 0.0 }
 0x203   :  { %v479_v60 = vpop.f32.mrf.mxu1  ;;  %v381_v63 = vadd.f32 %v380_v59, %v2331_v51  ;;  %v1389_v59 = vadd.f32 %v2583_v24, %v2650_v31 }
 0x204   :  { %v480_v0 = vadd.f32 %v479_v60, %v2333_v53 }
 0x205   :  { %vm553_vm4 = vcmp.gt.f32.partialorder %v381_v63, 0.0  ;;  %v627_v5 = vmul.f32 %v2338_v55, %v381_v63  ;;  %v1463_v1 = vmul.f32 %v2592_v40, %v1389_v59  ;;  %vm1425_vm11 = vcmp.gt.f32.partialorder %v1389_v59, 0.0 }
 0x206   :  { %1330 = vadd.xlane.f32.xlu2 %v1329_v15  ;;  %vm554_vm6 = vcmp.gt.f32.partialorder %v480_v0, 0.0  ;;  %v628_v6 = vmul.f32 %v2338_v55, %v480_v0  ;;  %v1086_v15 = vadd.f32 %v1085_v28, %v987_v10  ;;  %v1529_v28 = vld [vmem:[%s2974_s7 + $0x10] sm:$0xff] }
 0x207   :  { %1600 = vperm.xlu0 %2101, %v1498_v18   ;;  %v699_v8 = vsel %vm553_vm4, %v381_v63, %v627_v5  ;;  %v2719_v63 = vld [vmem:[%s2971_s4] ss:$0 sm:$0xff]  ;;  %v1499_v5 = vsel %vm1425_vm11, %v1389_v59, %v1463_v1 }
 0x208   :  { %v2666_v61 = vpop.xlane.xlu0 %1306  ;;  %v700_v7 = vsel %vm554_vm6, %v480_v0, %v628_v6  ;;  %v737_v12 = vpack.c.bf16 %v699_v8, %v697_v44  ;;  %v1179_v18 = vmul.f32 %v2451_v42, %v1086_v15  ;;  %vm1141_vm8 = vcmp.gt.f32.partialorder %v1086_v15, 0.0 }
 0x209   :  { %v738_v11 = vpack.c.bf16 %v700_v7, %v698_v2 }
 0x20a   :  { %1008 = vmatmul.bf16.gmra.mxu2 %v737_v12  ;;  %v1215_v26 = vsel %vm1141_vm8, %v1086_v15, %v1179_v18 }
 0x20b   :  { %2056 = vmatmul.msk.bf16.gmra.mxu3 %vm865_vm5, %v738_v11  ;;  %v1255_v37 = vmul.f32 %v2696_v23, %v1215_v26 }
 0x20d   :  { %v1338_v49 = vsel %vm1268_vm13, %v1255_v37, 0.0 }
 0x210   :  { %v2672_v3 = vpop.xlane.xlu1 %1309 }
 0x211   :  { %1585 = vperm.xlu1 %2102, %v1495_v27   ;;  %v1465_v27 = vmul.f32 %v2592_v40, %v1391_v20 }
 0x213   :  { %v1501_v45 = vsel %vm1427_vm9, %v1391_v20, %v1465_v27 }
 0x218   :  { %v2661_v54 = vpop.xlane.xlu2 %1312 }
 0x219   :  { %1595 = vperm.xlu1 %2102, %v1497_v32  }
 0x21e   :  { %1590 = vperm.xlu2 %2103, %v1496_v38   ;;  %v991_v38 = vpop.f32.mrf.mxu2  ;;  %v1093_v57 = vpop.f32.mrf.mxu3 }
 0x21f   :  { %v992_v9 = vadd.f32 %v2719_v63, %v991_v38 }
 0x220   :  { %v2680_v13 = vpop.xlane.xlu0 %1315 }
 0x221   :  { %v1091_v11 = vadd.f32 %v1090_v50, %v992_v9 }
 0x223   :  { %v1181_v18 = vmul.f32 %v2451_v42, %v1091_v11  ;;  %vm1143_vm0 = vcmp.gt.f32.partialorder %v1091_v11, 0.0 }
 0x226   :  { %v994_v56 = vpop.f32.mrf.mxu2  ;;  %v1095_v2 = vpop.f32.mrf.mxu3 }
 0x227   :  { %v995_v10 = vadd.f32 %v2719_v63, %v994_v56 }
 0x228   :  { %v2683_v16 = vpop.xlane.xlu1 %1318 }
 0x229   :  { %v1094_v12 = vadd.f32 %v1093_v57, %v995_v10 }
 0x22b   :  { %v1182_v19 = vmul.f32 %v2451_v42, %v1094_v12  ;;  %vm1144_vm14 = vcmp.gt.f32.partialorder %v1094_v12, 0.0 }
 0x22d   :  { %v1218_v25 = vsel %vm1144_vm14, %v1094_v12, %v1182_v19  ;;  %v1392_v19 = vadd.f32 %v2583_v24, %v2654_v41 }
 0x22e   :  { %v996_v60 = vpop.f32.mrf.mxu2 }
 0x22f   :  { %v997_v0 = vadd.f32 %v2719_v63, %v996_v60  ;;  %vm1428_vm7 = vcmp.gt.f32.partialorder %v1392_v19, 0.0 }
 0x230   :  { %v2674_v4 = vpop.xlane.xlu2 %1321 }
 0x231   :  { %1342 = vadd.xlane.f32.xlu0 %v1341_v62  ;;  %v1464_v62 = vmul.f32 %v2592_v40, %v1390_v58  ;;  %v1096_v47 = vadd.f32 %v1095_v2, %v997_v0  ;;  %v1533_v2 = vld [vmem:[%s2974_s7 + $0x30] sm:$0xff] }
 0x233   :  { %v1566_v21 = vpop.permute.xlu0 %1565  ;;  %v1500_v44 = vsel %vm1426_vm10, %v1390_v58, %v1464_v62  ;;  %v1183_v31 = vmul.f32 %v2451_v42, %v1096_v47  ;;  %vm1145_vm12 = vcmp.gt.f32.partialorder %v1096_v47, 0.0 }
 0x234   :  { %v1743_v30 = vmul.f32 %v1566_v21, %v1527_v33 }
 0x235   :  { %v1219_v6 = vsel %vm1145_vm12, %v1096_v47, %v1183_v31 }
 0x236   :  { %v1259_v7 = vmul.f32 %v2696_v23, %v1219_v6 }
 0x238   :  { %v1576_v17 = vpop.permute.xlu2 %1575  ;;  %v1350_v8 = vsel %vm1268_vm13, %v1259_v7, 0.0 }
 0x239   :  { %v1745_v39 = vmul.f32 %v1576_v17, %v1529_v28  ;;  %v1394_v17 = vadd.f32 %v2583_v24, %v2672_v3 }
 0x23b   :  { %v1468_v21 = vmul.f32 %v2592_v40, %v1394_v17  ;;  %vm1430_vm15 = vcmp.gt.f32.partialorder %v1394_v17, 0.0 }
 0x240   :  { %v1571_v29 = vpop.permute.xlu1 %1570  ;;  %v1581_v35 = vpop.permute.xlu2 %1580 }
 0x241   :  { %v1744_v32 = vmul.f32 %v1571_v29, %v1528_v22  ;;  %v1746_v46 = vmul.f32 %v1581_v35, %v1530_v34  ;;  %v1217_v22 = vsel %vm1143_vm0, %v1091_v11, %v1181_v18  ;;  %v1531_v29 = vld [vmem:[%s2974_s7 + $0x20] sm:$0xff]  ;;  %v1504_v35 = vsel %vm1430_vm15, %v1394_v17, %v1468_v21 }
 0x242   :  { %v1393_v18 = vadd.f32 %v2583_v24, %v2666_v61 }
 0x243   :  { %v1779_v43 = vadd.f32 %v1744_v32, %v1743_v30  ;;  %1336 = vadd.xlane.f32.xlu1 %v1335_v36  ;;  %v1257_v30 = vmul.f32 %v2696_v23, %v1217_v22  ;;  %v1258_v32 = vmul.f32 %v2696_v23, %v1218_v25  ;;  %v1532_v36 = vld [vmem:[%s2974_s7 + $0x28] sm:$0xff]  ;;  %v1466_v25 = vmul.f32 %v2592_v40, %v1392_v19 }
 0x244   :  { %v1467_v22 = vmul.f32 %v2592_v40, %v1393_v18  ;;  %vm1429_vm6 = vcmp.gt.f32.partialorder %v1393_v18, 0.0 }
 0x245   :  { %v1780_v48 = vadd.f32 %v1779_v43, %v1745_v39  ;;  %1615 = vperm.xlu0 %2101, %v1501_v45  }
 0x247   :  { %1339 = vadd.xlane.f32.xlu2 %v1338_v49  ;;  %v2709_v52 = vadd.f32 %v1780_v48, %v1746_v46  ;;  %v1344_v46 = vsel %vm1268_vm13, %v1257_v30, 0.0  ;;  %v1347_v48 = vsel %vm1268_vm13, %v1258_v32, 0.0 }
 0x249   :  { %v2739_v27 = vpop.f32.mrf.mxu2 }
 0x24a   :  { %v1098_v43 = vpop.f32.mrf.mxu3 }
 0x251   :  { %v1001_v47 = vpop.f32.mrf.mxu2 }
 0x252   :  { %v1100_v12 = vpop.f32.mrf.mxu3 }
 0x253   :  { %v383_v33 = vpop.f32.mrf.mxu0  ;;  %v482_v26 = vpop.f32.mrf.mxu1 }
 0x254   :  { %v384_v28 = vadd.f32 %v383_v33, %v2331_v51  ;;  %v483_v34 = vadd.f32 %v482_v26, %v2333_v53 }
 0x256   :  { %v629_v45 = vmul.f32 %v2338_v55, %v384_v28  ;;  %vm555_vm1 = vcmp.gt.f32.partialorder %v384_v28, 0.0  ;;  %v630_v49 = vmul.f32 %v2338_v55, %v483_v34  ;;  %vm556_vm2 = vcmp.gt.f32.partialorder %v483_v34, 0.0 }
 0x258   :  { %v701_v1 = vsel %vm555_vm1, %v384_v28, %v629_v45  ;;  %v1503_v28 = vsel %vm1429_vm6, %v1393_v18, %v1467_v22 }
 0x25b   :  { %v385_v50 = vpop.f32.mrf.mxu0  ;;  %v484_v59 = vpop.f32.mrf.mxu1 }
 0x25c   :  { %1610 = vperm.xlu1 %2102, %v1500_v44   ;;  %v386_v58 = vadd.f32 %v385_v50, %v2331_v51  ;;  %v485_v60 = vadd.f32 %v484_v59, %v2333_v53  ;;  %v702_v44 = vsel %vm556_vm2, %v483_v34, %v630_v49  ;;  %v1534_v51 = vld [vmem:[%s2974_s7 + $0x38] sm:$0xff]  ;;  %v1000_v34 = vadd.f32 %v2719_v63, %v2739_v27  ;;  %v1535_v50 = vld [vmem:[%s2974_s7 + $0x40] sm:$0xff] }
 0x25e   :  { %v2728_v14 = vpop.xlane.xlu0 %1324  ;;  %vm557_vm3 = vcmp.gt.f32.partialorder %v386_v58, 0.0  ;;  %v631_v0 = vmul.f32 %v2338_v55, %v386_v58  ;;  %vm558_vm4 = vcmp.gt.f32.partialorder %v485_v60, 0.0 }
 0x25f   :  { %1605 = vperm.xlu2 %2103, %v1499_v5   ;;  %v1103_v21 = vpop.f32.mrf.mxu3 }
 0x260   :  { %v703_v5 = vsel %vm557_vm3, %v386_v58, %v631_v0 }
 0x261   :  { %v739_v7 = vpack.c.bf16 %v703_v5, %v701_v1 }
 0x263   :  { %1013 = vmatmul.bf16.gmra.mxu2 %v739_v7 }
 0x266   :  { %v2742_v3 = vpop.xlane.xlu0 %1333 }
 0x26b   :  { %v2736_v20 = vpop.xlane.xlu1 %1327 }
 0x26f   :  { %1351 = vadd.xlane.f32.xlu0 %v1350_v8 }
 0x279   :  { %v2730_v15 = vpop.xlane.xlu2 %1330  ;;  %v1601_v53 = vpop.permute.xlu0 %1600 }
 0x27a   :  { %v1750_v10 = vmul.f32 %v1601_v53, %v1534_v51  ;;  %v1537_v51 = vld [vmem:[%s2974_s7 + $0x50] sm:$0xff] }
 0x281   :  { %v1591_v37 = vpop.permute.xlu2 %1590 }
 0x282   :  { %v1748_v56 = vmul.f32 %v1591_v37, %v1532_v36  ;;  %v1397_v36 = vadd.f32 %v2583_v24, %v2683_v16  ;;  %v1099_v37 = vadd.f32 %v1098_v43, %v1000_v34 }
 0x283   :  { %1630 = vperm.xlu0 %2101, %v1504_v35   ;;  %v1586_v38 = vpop.permute.xlu1 %1585  ;;  %v1002_v35 = vadd.f32 %v2719_v63, %v1001_v47  ;;  %v1536_v47 = vld [vmem:[%s2974_s7 + $0x48] sm:$0xff] }
 0x284   :  { %v1747_v39 = vmul.f32 %v1586_v38, %v1531_v29  ;;  %v1502_v29 = vsel %vm1428_vm7, %v1392_v19, %v1466_v25  ;;  %v1471_v45 = vmul.f32 %v2592_v40, %v1397_v36  ;;  %vm1433_vm8 = vcmp.gt.f32.partialorder %v1397_v36, 0.0 }
 0x285   :  { %v1101_v38 = vadd.f32 %v1100_v12, %v1002_v35  ;;  %vm1146_vm9 = vcmp.gt.f32.partialorder %v1099_v37, 0.0 }
 0x286   :  { %v1782_v57 = vadd.f32 %v2709_v52, %v1747_v39  ;;  %1345 = vadd.xlane.f32.xlu1 %v1344_v46  ;;  %v632_v52 = vmul.f32 %v2338_v55, %v485_v60  ;;  %v1004_v55 = vpop.f32.mrf.mxu2  ;;  %v1184_v46 = vmul.f32 %v2451_v42, %v1099_v37  ;;  %v1507_v27 = vsel %vm1433_vm8, %v1397_v36, %v1471_v45 }
 0x287   :  { %v1005_v33 = vadd.f32 %v2719_v63, %v1004_v55  ;;  %vm1147_vm10 = vcmp.gt.f32.partialorder %v1101_v38, 0.0  ;;  %v1396_v55 = vadd.f32 %v2583_v24, %v2680_v13 }
 0x288   :  { %1348 = vadd.xlane.f32.xlu2 %v1347_v48  ;;  %v1783_v62 = vadd.f32 %v1782_v57, %v1748_v56  ;;  %v704_v6 = vsel %vm558_vm4, %v485_v60, %v632_v52  ;;  %v1185_v48 = vmul.f32 %v2451_v42, %v1101_v38  ;;  %v1220_v43 = vsel %vm1146_vm9, %v1099_v37, %v1184_v46  ;;  %v1105_v57 = vpop.f32.mrf.mxu3 }
 0x289   :  { %v740_v9 = vpack.c.bf16 %v704_v6, %v702_v44  ;;  %v1104_v26 = vadd.f32 %v1103_v21, %v1005_v33  ;;  %v1470_v33 = vmul.f32 %v2592_v40, %v1396_v55  ;;  %vm1432_vm0 = vcmp.gt.f32.partialorder %v1396_v55, 0.0 }
 0x28a   :  { %v1221_v16 = vsel %vm1147_vm10, %v1101_v38, %v1185_v48 }
 0x28b   :  { %v1596_v31 = vpop.permute.xlu1 %1595  ;;  %2057 = vmatmul.msk.bf16.gmra.mxu3 %vm865_vm5, %v740_v9  ;;  %v1186_v30 = vmul.f32 %v2451_v42, %v1104_v26  ;;  %vm1148_vm5 = vcmp.gt.f32.partialorder %v1104_v26, 0.0  ;;  %v1261_v60 = vmul.f32 %v2696_v23, %v1221_v16  ;;  %v1506_v25 = vsel %vm1432_vm0, %v1396_v55, %v1470_v33 }
 0x28c   :  { %v1749_v8 = vmul.f32 %v1596_v31, %v1533_v2 }
 0x28d   :  { %v1222_v61 = vsel %vm1148_vm5, %v1104_v26, %v1186_v30  ;;  %v1356_v2 = vsel %vm1268_vm13, %v1261_v60, 0.0 }
 0x28e   :  { %v1784_v11 = vadd.f32 %v1783_v62, %v1749_v8  ;;  %v1262_v41 = vmul.f32 %v2696_v23, %v1222_v61  ;;  %v1006_v49 = vpop.f32.mrf.mxu2  ;;  %v1260_v62 = vmul.f32 %v2696_v23, %v1220_v43 }
 0x28f   :  { %v1007_v30 = vadd.f32 %v2719_v63, %v1006_v49 }
 0x290   :  { %v1785_v17 = vadd.f32 %v1784_v11, %v1750_v10  ;;  %v1359_v32 = vsel %vm1268_vm13, %v1262_v41, 0.0  ;;  %v1353_v44 = vsel %vm1268_vm13, %v1260_v62, 0.0  ;;  %v1108_v5 = vpop.f32.mrf.mxu3 }
 0x291   :  { %v1106_v34 = vadd.f32 %v1105_v57, %v1007_v30 }
 0x293   :  { %v1187_v38 = vmul.f32 %v2451_v42, %v1106_v34  ;;  %vm1149_vm1 = vcmp.gt.f32.partialorder %v1106_v34, 0.0 }
 0x295   :  { %v1223_v16 = vsel %vm1149_vm1, %v1106_v34, %v1187_v38 }
 0x296   :  { %v1009_v52 = vpop.f32.mrf.mxu2  ;;  %v1263_v62 = vmul.f32 %v2696_v23, %v1223_v16 }
 0x297   :  { %v1010_v13 = vadd.f32 %v2719_v63, %v1009_v52  ;;  %v1540_v52 = vld [vmem:[%s2974_s7 + $0x68] sm:$0xff] }
 0x298   :  { %v1110_v12 = vpop.f32.mrf.mxu3 }
 0x299   :  { %v1109_v61 = vadd.f32 %v1108_v5, %v1010_v13 }
 0x29b   :  { %v1188_v35 = vmul.f32 %v2451_v42, %v1109_v61  ;;  %vm1150_vm15 = vcmp.gt.f32.partialorder %v1109_v61, 0.0 }
 0x29d   :  { %v1224_v45 = vsel %vm1150_vm15, %v1109_v61, %v1188_v35 }
 0x29e   :  { %v1011_v9 = vpop.f32.mrf.mxu2 }
 0x29f   :  { %1625 = vperm.xlu1 %2102, %v1503_v28   ;;  %v1012_v11 = vadd.f32 %v2719_v63, %v1011_v9 }
 0x2a0   :  { %1620 = vperm.xlu2 %2103, %v1502_v29   ;;  %v1400_v29 = vadd.f32 %v2583_v24, %v2736_v20  ;;  %v1538_v20 = vld [vmem:[%s2974_s7 + $0x58] sm:$0xff] }
 0x2a1   :  { %v1111_v18 = vadd.f32 %v1110_v12, %v1012_v11 }
 0x2a2   :  { %v1474_v41 = vmul.f32 %v2592_v40, %v1400_v29  ;;  %vm1436_vm14 = vcmp.gt.f32.partialorder %v1400_v29, 0.0 }
 0x2a3   :  { %v1189_v21 = vmul.f32 %v2451_v42, %v1111_v18  ;;  %vm1151_vm12 = vcmp.gt.f32.partialorder %v1111_v18, 0.0 }
 0x2a4   :  { %v2792_v59 = vpop.xlane.xlu0 %1342  ;;  %v1510_v37 = vsel %vm1436_vm14, %v1400_v29, %v1474_v41  ;;  %v1541_v29 = vld [vmem:[%s2974_s7 + $0x70] sm:$0xff] }
 0x2a5   :  { %v1225_v26 = vsel %vm1151_vm12, %v1111_v18, %v1189_v21 }
 0x2ad   :  { %1360 = vadd.xlane.f32.xlu0 %v1359_v32 }
 0x2b6   :  { %v1337_v1 = vpop.xlane.xlu1 %1336 }
 0x2b7   :  { %v1616_v53 = vpop.permute.xlu0 %1615  ;;  %v1403_v36 = vadd.f32 %v2583_v24, %v1337_v1  ;;  %v1362_v1 = vsel %vm1268_vm13, %v1263_v62, 0.0 }
 0x2b8   :  { %v1753_v7 = vmul.f32 %v1616_v53, %v1537_v51 }
 0x2b9   :  { %v1477_v46 = vmul.f32 %v2592_v40, %v1403_v36  ;;  %vm1439_vm2 = vcmp.gt.f32.partialorder %v1403_v36, 0.0 }
 0x2ba   :  { %v2784_v39 = vpop.xlane.xlu2 %1339 }
 0x2bb   :  { %v1513_v57 = vsel %vm1439_vm2, %v1403_v36, %v1477_v46 }
 0x2c1   :  { %1645 = vperm.xlu0 %2101, %v1507_v27   ;;  %v1264_v27 = vmul.f32 %v2696_v23, %v1224_v45 }
 0x2c2   :  { %v1606_v56 = vpop.permute.xlu2 %1605 }
 0x2c3   :  { %v1751_v58 = vmul.f32 %v1606_v56, %v1535_v50  ;;  %v1365_v60 = vsel %vm1268_vm13, %v1264_v27, 0.0 }
 0x2c5   :  { %v1786_v0 = vadd.f32 %v1785_v17, %v1751_v58  ;;  %v1395_v17 = vadd.f32 %v2583_v24, %v2661_v54  ;;  %v1265_v54 = vmul.f32 %v2696_v23, %v1225_v26 }
 0x2c7   :  { %v1469_v19 = vmul.f32 %v2592_v40, %v1395_v17  ;;  %vm1431_vm11 = vcmp.gt.f32.partialorder %v1395_v17, 0.0  ;;  %v1368_v28 = vsel %vm1268_vm13, %v1265_v54, 0.0 }
 0x2c9   :  { %1357 = vadd.xlane.f32.xlu2 %v1356_v2  ;;  %1354 = vadd.xlane.f32.xlu1 %v1353_v44  ;;  %v1505_v22 = vsel %vm1431_vm11, %v1395_v17, %v1469_v19  ;;  %v1539_v44 = vld [vmem:[%s2974_s7 + $0x60] sm:$0xff] }
 0x2ce   :  { %v1611_v31 = vpop.permute.xlu1 %1610 }
 0x2cf   :  { %v1752_v6 = vmul.f32 %v1611_v31, %v1536_v47 }
 0x2d1   :  { %v1787_v8 = vadd.f32 %v1786_v0, %v1752_v6 }
 0x2d3   :  { %v1788_v10 = vadd.f32 %v1787_v8, %v1753_v7  ;;  %v1398_v7 = vadd.f32 %v2583_v24, %v2674_v4  ;;  %v1399_v8 = vadd.f32 %v2583_v24, %v2728_v14 }
 0x2d5   :  { %v1472_v9 = vmul.f32 %v2592_v40, %v1398_v7  ;;  %vm1434_vm4 = vcmp.gt.f32.partialorder %v1398_v7, 0.0  ;;  %vm1435_vm6 = vcmp.gt.f32.partialorder %v1399_v8, 0.0 }
 0x2d7   :  { %v1508_v11 = vsel %vm1434_vm4, %v1398_v7, %v1472_v9 }
 0x2e1   :  { %1635 = vperm.xlu2 %2103, %v1505_v22  }
 0x2e2   :  { %1640 = vperm.xlu1 %2102, %v1506_v25   ;;  %v2830_v58 = vpop.xlane.xlu0 %1351 }
 0x2e6   :  { %v1014_v17 = vpop.f32.mrf.mxu2 }
 0x2e7   :  { %v1015_v4 = vadd.f32 %v2719_v63, %v1014_v17 }
 0x2eb   :  { %1369 = vadd.xlane.f32.xlu0 %v1368_v28 }
 0x2ee   :  { %v1016_v18 = vpop.f32.mrf.mxu2 }
 0x2ef   :  { %v1017_v19 = vadd.f32 %v2719_v63, %v1016_v18 }
 0x2f5   :  { %v1631_v47 = vpop.permute.xlu0 %1630 }
 0x2f6   :  { %v1756_v53 = vmul.f32 %v1631_v47, %v1540_v52 }
 0x2f9   :  { %v1346_v48 = vpop.xlane.xlu1 %1345 }
 0x2fa   :  { %v1406_v43 = vadd.f32 %v2583_v24, %v1346_v48 }
 0x2fb   :  { %v2819_v32 = vpop.xlane.xlu2 %1348 }
 0x2fc   :  { %v1480_v0 = vmul.f32 %v2592_v40, %v1406_v43  ;;  %vm1442_vm3 = vcmp.gt.f32.partialorder %v1406_v43, 0.0 }
 0x2fe   :  { %v1516_v2 = vsel %vm1442_vm3, %v1406_v43, %v1480_v0  ;;  %v2867_v43 = vld [vmem:[#allocation2] ss:$0 sm:$0xff] }
 0x2ff   :  { %1660 = vperm.xlu0 %2101, %v1510_v37   ;;  %v1408_v47 = vadd.f32 %v2867_v43, %v2830_v58 }
 0x301   :  { %vm1444_vm0 = vcmp.gt.f32.partialorder %v1408_v47, 0.0 }
 0x303   :  { %v1621_v49 = vpop.permute.xlu2 %1620 }
 0x304   :  { %v1754_v50 = vmul.f32 %v1621_v49, %v1538_v20  ;;  %v1543_v20 = vld [vmem:[%s2974_s7 + $0x80] sm:$0xff] }
 0x306   :  { %v1789_v56 = vadd.f32 %v1788_v10, %v1754_v50  ;;  %v1473_v10 = vmul.f32 %v2592_v40, %v1399_v8 }
 0x307   :  { %1675 = vperm.xlu0 %2101, %v1513_v57   ;;  %v1402_v57 = vadd.f32 %v2867_v43, %v2742_v3  ;;  %v1407_v3 = vadd.f32 %v2867_v43, %v2819_v32 }
 0x308   :  { %v1509_v12 = vsel %vm1435_vm6, %v1399_v8, %v1473_v10 }
 0x309   :  { %v1476_v0 = vmul.f32 %v2592_v40, %v1402_v57  ;;  %vm1438_vm9 = vcmp.gt.f32.partialorder %v1402_v57, 0.0  ;;  %vm1443_vm12 = vcmp.gt.f32.partialorder %v1407_v3, 0.0 }
 0x30a   :  { %1366 = vadd.xlane.f32.xlu2 %v1365_v60  ;;  %v1404_v60 = vadd.f32 %v2867_v43, %v2784_v39  ;;  %v1481_v39 = vmul.f32 %v2592_v40, %v1407_v3 }
 0x30c   :  { %1363 = vadd.xlane.f32.xlu1 %v1362_v1  ;;  %v1478_v1 = vmul.f32 %v2592_v40, %v1404_v60  ;;  %vm1440_vm10 = vcmp.gt.f32.partialorder %v1404_v60, 0.0 }
 0x30e   :  { %v1113_v55 = vpop.f32.mrf.mxu3 }
 0x30f   :  { %1690 = vperm.xlu0 %2101, %v1516_v2   ;;  %v1114_v26 = vadd.f32 %v1113_v55, %v1015_v4  ;;  %v1405_v2 = vadd.f32 %v2867_v43, %v2792_v59 }
 0x311   :  { %v1626_v5 = vpop.permute.xlu1 %1625  ;;  %v1190_v63 = vmul.f32 %v2451_v42, %v1114_v26  ;;  %vm1152_vm8 = vcmp.gt.f32.partialorder %v1114_v26, 0.0  ;;  %v1479_v52 = vmul.f32 %v2592_v40, %v1405_v2  ;;  %vm1441_vm11 = vcmp.gt.f32.partialorder %v1405_v2, 0.0 }
 0x312   :  { %v1755_v51 = vmul.f32 %v1626_v5, %v1539_v44  ;;  %v1514_v44 = vsel %vm1440_vm10, %v1404_v60, %v1478_v1 }
 0x313   :  { %v1226_v35 = vsel %vm1152_vm8, %v1114_v26, %v1190_v63  ;;  %v1515_v5 = vsel %vm1441_vm11, %v1405_v2, %v1479_v52  ;;  %v1552_v52 = vld [vmem:[%s2974_s7 + $0xc8] sm:$0xff] }
 0x314   :  { %v1790_v31 = vadd.f32 %v1789_v56, %v1755_v51  ;;  %v1266_v38 = vmul.f32 %v2696_v23, %v1226_v35  ;;  %v1517_v51 = vsel %vm1443_vm12, %v1407_v3, %v1481_v39 }
 0x316   :  { %v1791_v6 = vadd.f32 %v1790_v31, %v1756_v53  ;;  %v1115_v33 = vpop.f32.mrf.mxu3  ;;  %v1371_v45 = vsel %vm1268_vm13, %v1266_v38, 0.0  ;;  %v1482_v53 = vmul.f32 %v2592_v40, %v1408_v47 }
 0x317   :  { %v1116_v21 = vadd.f32 %v1115_v33, %v1017_v19 }
 0x319   :  { %v1191_v54 = vmul.f32 %v2451_v42, %v1116_v21  ;;  %vm1153_vm5 = vcmp.gt.f32.partialorder %v1116_v21, 0.0  ;;  %v1542_v42 = vld [vmem:[%s2974_s7 + $0x78] sm:$0xff] }
 0x31b   :  { %v1227_v30 = vsel %vm1153_vm5, %v1116_v21, %v1191_v54  ;;  %v1544_v21 = vld [vmem:[%s2974_s7 + $0x88] sm:$0xff] }
 0x320   :  { %v1361_v36 = vpop.xlane.xlu0 %1360 }
 0x321   :  { %v1411_v31 = vadd.f32 %v2867_v43, %v1361_v36 }
 0x322   :  { %1650 = vperm.xlu2 %2103, %v1508_v11  }
 0x323   :  { %v1485_v58 = vmul.f32 %v2592_v40, %v1411_v31  ;;  %vm1447_vm15 = vcmp.gt.f32.partialorder %v1411_v31, 0.0 }
 0x325   :  { %1655 = vperm.xlu1 %2102, %v1509_v12   ;;  %v1521_v17 = vsel %vm1447_vm15, %v1411_v31, %v1485_v58 }
 0x333   :  { %v1646_v46 = vpop.permute.xlu0 %1645 }
 0x334   :  { %v1759_v27 = vmul.f32 %v1646_v46, %v1543_v20  ;;  %v1548_v46 = vld [vmem:[%s2974_s7 + $0xa8] sm:$0xff] }
 0x33c   :  { %v1358_v14 = vpop.xlane.xlu2 %1357  ;;  %v1355_v22 = vpop.xlane.xlu1 %1354 }
 0x33d   :  { %v1409_v25 = vadd.f32 %v2583_v24, %v1355_v22  ;;  %v1267_v24 = vmul.f32 %v2696_v23, %v1227_v30  ;;  %v1401_v23 = vadd.f32 %v2867_v43, %v2730_v15  ;;  %v1512_v15 = vsel %vm1438_vm9, %v1402_v57, %v1476_v0  ;;  %v1551_v0 = vld [vmem:[%s2974_s7 + $0xc0] sm:$0xff] }
 0x33e   :  { %v1410_v59 = vadd.f32 %v2867_v43, %v1358_v14 }
 0x33f   :  { %v1483_v28 = vmul.f32 %v2592_v40, %v1409_v25  ;;  %vm1445_vm7 = vcmp.gt.f32.partialorder %v1409_v25, 0.0  ;;  %v1374_v37 = vsel %vm1268_vm13, %v1267_v24, 0.0  ;;  %v1475_v56 = vmul.f32 %v2592_v40, %v1401_v23 }
 0x340   :  { %vm1437_vm13 = vcmp.gt.f32.partialorder %v1401_v23, 0.0  ;;  %v1484_v32 = vmul.f32 %v2592_v40, %v1410_v59  ;;  %vm1446_vm14 = vcmp.gt.f32.partialorder %v1410_v59, 0.0 }
 0x341   :  { %v1519_v13 = vsel %vm1445_vm7, %v1409_v25, %v1483_v28  ;;  %v1511_v62 = vsel %vm1437_vm13, %v1401_v23, %v1475_v56  ;;  %v1545_v28 = vld [vmem:[%s2974_s7 + $0x90] sm:$0xff]  ;;  %vm1819_vm7 = vcmask 80896  }
 0x342   :  { %1705 = vperm.xlu0 %2101, %v1519_v13   ;;  %v1520_v7 = vsel %vm1446_vm14, %v1410_v59, %v1484_v32 }
 0x344   :  { %v1636_v61 = vpop.permute.xlu2 %1635 }
 0x345   :  { %v1757_v41 = vmul.f32 %v1636_v61, %v1541_v29 }
 0x347   :  { %v1792_v34 = vadd.f32 %v1791_v6, %v1757_v41  ;;  %v1518_v6 = vsel %vm1444_vm0, %v1408_v47, %v1482_v53  ;;  %v1554_v53 = vld [vmem:[%s2974_s7 + $0xd8] sm:$0xff] }
 0x34b   :  { %1375 = vadd.xlane.f32.xlu2 %v1374_v37 }
 0x34f   :  { %1372 = vadd.xlane.f32.xlu1 %v1371_v45  ;;  %v1546_v45 = vld [vmem:[%s2974_s7 + $0x98] sm:$0xff] }
 0x354   :  { %v1641_v48 = vpop.permute.xlu1 %1640 }
 0x355   :  { %v1758_v49 = vmul.f32 %v1641_v48, %v1542_v42  ;;  %v1547_v42 = vld [vmem:[%s2974_s7 + $0xa0] sm:$0xff] }
 0x357   :  { %v1793_v50 = vadd.f32 %v1792_v34, %v1758_v49 }
 0x359   :  { %v1794_v16 = vadd.f32 %v1793_v50, %v1759_v27 }
 0x35e   :  { %v1370_v8 = vpop.xlane.xlu0 %1369 }
 0x35f   :  { %v1414_v9 = vadd.f32 %v2867_v43, %v1370_v8 }
 0x361   :  { %v1488_v19 = vmul.f32 %v2592_v40, %v1414_v9  ;;  %vm1450_vm3 = vcmp.gt.f32.partialorder %v1414_v9, 0.0 }
 0x363   :  { %1665 = vperm.xlu2 %2103, %v1511_v62   ;;  %v1524_v25 = vsel %vm1450_vm3, %v1414_v9, %v1488_v19  ;;  %v1550_v62 = vld [vmem:[%s2974_s7 + $0xb8] sm:$0xff]  ;;  %v1555_v9 = vld [vmem:[%s2974_s7 + $0xe0] sm:$0xff] }
 0x368   :  { %1670 = vperm.xlu1 %2102, %v1512_v15  }
 0x36b   :  { %1680 = vperm.xlu2 %2103, %v1514_v44  }
 0x370   :  { %1685 = vperm.xlu1 %2102, %v1515_v5  }
 0x371   :  { %v1661_v38 = vpop.permute.xlu0 %1660 }
 0x372   :  { %v1762_v49 = vmul.f32 %v1661_v38, %v1546_v45 }
 0x373   :  { %1695 = vperm.xlu2 %2103, %v1517_v51   ;;  %v1553_v51 = vld [vmem:[%s2974_s7 + $0xd0] sm:$0xff] }
 0x378   :  { %1700 = vperm.xlu1 %2102, %v1518_v6  }
 0x379   :  { %v1676_v23 = vpop.permute.xlu0 %1675 }
 0x37b   :  { %1710 = vperm.xlu2 %2103, %v1520_v7  }
 0x37d   :  { %v1367_v10 = vpop.xlane.xlu2 %1366 }
 0x37e   :  { %v1413_v11 = vadd.f32 %v2867_v43, %v1367_v10 }
 0x37f   :  { %v1364_v12 = vpop.xlane.xlu1 %1363 }
 0x380   :  { %v1487_v55 = vmul.f32 %v2592_v40, %v1413_v11  ;;  %v1412_v18 = vadd.f32 %v2867_v43, %v1364_v12  ;;  %1715 = vperm.xlu1 %2102, %v1521_v17   ;;  %vm1449_vm1 = vcmp.gt.f32.partialorder %v1413_v11, 0.0  ;;  %v1556_v17 = vld [vmem:[%s2974_s7 + $0xe8] sm:$0xff] }
 0x381   :  { %v1691_v39 = vpop.permute.xlu0 %1690 }
 0x382   :  { %v1486_v33 = vmul.f32 %v2592_v40, %v1412_v18  ;;  %v1523_v4 = vsel %vm1449_vm1, %v1413_v11, %v1487_v55  ;;  %vm1448_vm2 = vcmp.gt.f32.partialorder %v1412_v18, 0.0  ;;  %v1768_v59 = vmul.f32 %v1691_v39, %v1552_v52  ;;  %v1557_v55 = vld [vmem:[%s2974_s7 + $0xf0] sm:$0xff] }
 0x383   :  { %1725 = vperm.xlu2 %2103, %v1523_v4  }
 0x384   :  { %v1522_v14 = vsel %vm1448_vm2, %v1412_v18, %v1486_v33  ;;  %v1558_v33 = vld [vmem:[%s2974_s7 + $0xf8] sm:$0xff] }
 0x385   :  { %v1651_v22 = vpop.permute.xlu2 %1650  ;;  %1720 = vperm.xlu0 %2101, %v1522_v14  }
 0x386   :  { %v1760_v26 = vmul.f32 %v1651_v22, %v1544_v21 }
 0x388   :  { %v1795_v54 = vadd.f32 %v1794_v16, %v1760_v26  ;;  %1730 = vperm.xlu1 %2102, %v1524_v25  }
 0x397   :  { %v1656_v13 = vpop.permute.xlu1 %1655 }
 0x398   :  { %v1761_v29 = vmul.f32 %v1656_v13, %v1545_v28 }
 0x39a   :  { %v1796_v63 = vadd.f32 %v1795_v54, %v1761_v29  ;;  %v1559_v54 = vld [vmem:[%s2974_s7 + $0x100] sm:$0xff]  ;;  %v1560_v29 = vld [vmem:[%s2974_s7 + $0x108] sm:$0xff] }
 0x39c   :  { %v1797_v27 = vadd.f32 %v1796_v63, %v1762_v49 }
 0x3b4   :  { %v1706_v58 = vpop.permute.xlu0 %1705 }
 0x3b5   :  { %v1771_v12 = vmul.f32 %v1706_v58, %v1555_v9 }
 0x3be   :  { %v1376_v30 = vpop.xlane.xlu2 %1375 }
 0x3bf   :  { %v1416_v61 = vadd.f32 %v2867_v43, %v1376_v30 }
 0x3c1   :  { %v1490_v41 = vmul.f32 %v2592_v40, %v1416_v61  ;;  %vm1452_vm4 = vcmp.gt.f32.partialorder %v1416_v61, 0.0 }
 0x3c2   :  { %v1373_v24 = vpop.xlane.xlu1 %1372 }
 0x3c3   :  { %v1415_v34 = vadd.f32 %v2867_v43, %v1373_v24  ;;  %v1526_v35 = vsel %vm1452_vm4, %v1416_v61, %v1490_v41  ;;  %v1549_v43 = vld [vmem:[%s2974_s7 + $0xb0] sm:$0xff] }
 0x3c4   :  { %1740 = vperm.xlu2 %2103, %v1526_v35   ;;  %v1765_v60 = vmul.f32 %v1676_v23, %v1549_v43  ;;  %v1561_v24 = vld [vmem:[%s2974_s7 + $0x110] sm:$0xff] }
 0x3c5   :  { %v1489_v36 = vmul.f32 %v2592_v40, %v1415_v34  ;;  %vm1451_vm6 = vcmp.gt.f32.partialorder %v1415_v34, 0.0 }
 0x3c6   :  { %v1666_v20 = vpop.permute.xlu2 %1665 }
 0x3c7   :  { %v1525_v37 = vsel %vm1451_vm6, %v1415_v34, %v1489_v36  ;;  %v1763_v40 = vmul.f32 %v1666_v20, %v1547_v42  ;;  %v1562_v34 = vld [vmem:[%s2974_s7 + $0x118] sm:$0xff]  ;;  %v2107_v20 = vld [vmem:[%s2975_s8] ss:$0 sm:$0xff] }
 0x3c8   :  { %1735 = vperm.xlu0 %2101, %v1525_v37  }
 0x3c9   :  { %v1798_v16 = vadd.f32 %v1797_v27, %v1763_v40 }
 0x3ce   :  { %v1681_v57 = vpop.permute.xlu2 %1680 }
 0x3cf   :  { %v1766_v15 = vmul.f32 %v1681_v57, %v1550_v62 }
 0x3d6   :  { %v1696_v5 = vpop.permute.xlu2 %1695 }
 0x3d7   :  { %v1769_v6 = vmul.f32 %v1696_v5, %v1553_v51 }
 0x3da   :  { %v1671_v48 = vpop.permute.xlu1 %1670 }
 0x3db   :  { %v1764_v50 = vmul.f32 %v1671_v48, %v1548_v46 }
 0x3dd   :  { %v1799_v56 = vadd.f32 %v1798_v16, %v1764_v50 }
 0x3de   :  { %v1711_v11 = vpop.permute.xlu2 %1710 }
 0x3df   :  { %v1800_v2 = vadd.f32 %v1799_v56, %v1765_v60  ;;  %v1772_v21 = vmul.f32 %v1711_v11, %v1556_v17 }
 0x3e1   :  { %v1801_v44 = vadd.f32 %v1800_v2, %v1766_v15 }
 0x3e2   :  { %v1686_v1 = vpop.permute.xlu1 %1685 }
 0x3e3   :  { %v1767_v3 = vmul.f32 %v1686_v1, %v1551_v0 }
 0x3e5   :  { %v1802_v47 = vadd.f32 %v1801_v44, %v1767_v3 }
 0x3e6   :  { %v1726_v28 = vpop.permute.xlu2 %1725 }
 0x3e7   :  { %v1803_v31 = vadd.f32 %v1802_v47, %v1768_v59  ;;  %v1775_v30 = vmul.f32 %v1726_v28, %v1559_v54 }
 0x3e9   :  { %v1804_v8 = vadd.f32 %v1803_v31, %v1769_v6 }
 0x3ea   :  { %v1701_v32 = vpop.permute.xlu1 %1700 }
 0x3eb   :  { %v1770_v7 = vmul.f32 %v1701_v32, %v1554_v53 }
 0x3ed   :  { %v1805_v10 = vadd.f32 %v1804_v8, %v1770_v7 }
 0x3ef   :  { %v1806_v19 = vadd.f32 %v1805_v10, %v1771_v12 }
 0x3f1   :  { %v1807_v22 = vadd.f32 %v1806_v19, %v1772_v21 }
 0x3f2   :  { %v1716_v18 = vpop.permute.xlu1 %1715 }
 0x3f3   :  { %v1773_v14 = vmul.f32 %v1716_v18, %v1557_v55 }
 0x3f5   :  { %v1808_v26 = vadd.f32 %v1807_v22, %v1773_v14 }
 0x3f7   :  { %v1721_v4 = vpop.permute.xlu0 %1720 }
 0x3f8   :  { %v1774_v25 = vmul.f32 %v1721_v4, %v1558_v33 }
 0x3fa   :  { %v1809_v13 = vadd.f32 %v1808_v26, %v1774_v25  ;;  %v1731_v63 = vpop.permute.xlu1 %1730 }
 0x3fb   :  { %v1776_v61 = vmul.f32 %v1731_v63, %v1560_v29 }
 0x3fc   :  { %v1810_v41 = vadd.f32 %v1809_v13, %v1775_v30 }
 0x3fe   :  { %v1811_v37 = vadd.f32 %v1810_v41, %v1776_v61 }
 0x41e   :  { %v1741_v35 = vpop.permute.xlu2 %1740 }
 0x41f   :  { %v1778_v45 = vmul.f32 %v1741_v35, %v1562_v34 }
 0x43a   :  { %v1736_v36 = vpop.permute.xlu0 %1735 }
 0x43b   :  { %v1777_v38 = vmul.f32 %v1736_v36, %v1561_v24 }
 0x43d   :  { %v1812_v42 = vadd.f32 %v1811_v37, %v1777_v38 }
 0x43f   :  { %v1813_v46 = vadd.f32 %v1812_v42, %v1778_v45 }
 0x441   :  { %v1818_v48 = vadd.f32 %v2107_v20, %v1813_v46 }
 0x443   :  { %v1820_v49 = vsel %vm1819_vm7, %v1818_v48, -inf }
 0x444   :  { %1821 = vmax.xlane.f32.xlu1 %v1820_v49 }
 0x4b7   :  { %v1822_v40 = vpop.xlane.xlu1 %1821 }
 0x4b8   :  { %v1823_v27 = vsub.f32 %v1818_v48, %v1822_v40 }
 0x4ba   :  { %v1824_v50 = vmul.f32 1.442695, %v1823_v27 }
 0x4bc   :  { %2108 = vpow2.f32 %v1824_v50 }
 0x4c2   :  { %v2109_v16 = vpop.eup %2108 }
 0x4c3   :  { %v1826_v43 = vsel %vm1819_vm7, %v2109_v16, 0.0 }
 0x4c4   :  { %1827 = vadd.xlane.f32.xlu0 %v1826_v43 }
 0x537   :  { %v1828_v23 = vpop.xlane.xlu0 %1827 }
 0x538   :  { %2110 = vlog2.f32 %v1828_v23 }
 0x53e   :  { %v2111_v56 = vpop.eup %2110 }
 0x53f   :  { %v1830_v57 = vmul.f32 0.6931472, %v2111_v56 }
 0x541   :  { %v1831_v60 = vsub.f32 %v1823_v27, %v1830_v57 }
 0x543   :  { %1832 = vst.msk [vmem:[%s2977_s10] sm:$0xff] %vm1819_vm7, %v1831_v60 }
 0x544   :  { %1837 = vsyncpa [#allocation4], 1 }

</bundles_post_ra>
